<compile_context>
chip_gen: v7x
topology: tpu7x:2x2x1
jax: 0.10.0
libtpu: 0.0.40
codegen_flags: <defaults>
</compile_context>

<pallas_src>
import functools

import jax
import jax.numpy as jnp
from jax.experimental import pallas as pl
from jax.experimental.pallas import tpu as pltpu

EPS = 1e-5


def _pick_vmem_limit_bytes():
    """Generation-aware scoped VMEM limit (v5e/v6e: 128 MiB phys, v7x: 64 MiB)."""
    try:
        cap = int(pltpu.get_tpu_info().vmem_capacity_bytes)
    except Exception:
        cap = 64 * 1024 * 1024  # conservative: safe on every generation
    if cap >= 100 * 1024 * 1024:
        return 96 * 1024 * 1024  # v5e / v6e
    return 48 * 1024 * 1024      # v7x (keep headroom for double buffering)


_VMEM_LIMIT_BYTES = _pick_vmem_limit_bytes()

# Accurate-ish per-tile-element VMEM bytes for pass 2 (the heavier pass):
#   double-buffered f32 x / mid / out blocks (3 * 2 * 4 = 24 B) + haloed
#   compute-dtype window (~2 B) + f32 conv accumulator & temporaries (~12 B).
_BYTES_PER_TILE_ELEM = 40


def _choose_tile_h(H, W, C, vmem_limit, N=1, min_grid=4):
    """Largest divisor of H whose per-step working set fits the VMEM budget,
    preferring enough grid steps to keep both v7x TensorCores busy."""
    budget = int(vmem_limit * 0.7)
    divs = [th for th in range(1, H + 1) if H % th == 0]
    fitting = [th for th in divs if th * W * C * _BYTES_PER_TILE_ELEM <= budget]
    if not fitting:
        return 1
    pref = [th for th in fitting if (H // th) * N >= min_grid]
    return max(pref) if pref else max(fitting)


# ----------------------------------------------------------------------------
# Shared tile helpers (traced inside the kernels).
# ----------------------------------------------------------------------------
def _build_window(xm_ref, xt_ref, xb_ref, cd):
    """Assemble the zero-padded haloed window (1, TH+2, W+2, C) in VMEM.

    xm_ref: (1, TH, W, C) rows [i*TH, i*TH+TH) of the UNPADDED input
    xt_ref: (1, 1,  W, C) row i*TH-1 (clamped; masked to 0 at the top edge)
    xb_ref: (1, 1,  W, C) row i*TH+TH (clamped; masked to 0 at the bottom edge)
    """
    _, TH, W, C = xm_ref.shape
    i = pl.program_id(1)
    n_h = pl.num_programs(1)
    top = xt_ref[...].astype(cd) * (i > 0).astype(cd)
    bot = xb_ref[...].astype(cd) * (i < n_h - 1).astype(cd)
    xm = xm_ref[...].astype(cd)
    rows = jnp.concatenate([top, xm, bot], axis=1)           # (1, TH+2, W, C)
    zcol = jnp.zeros((1, TH + 2, 1, C), cd)
    return jnp.concatenate([zcol, rows, zcol], axis=2)       # (1, TH+2, W+2, C)


def _conv3x3(win, w, TH, W, C):
    """3x3 'same' conv on the haloed window as 9 shifted MXU matmuls, f32 acc."""
    M = TH * W
    acc = jnp.zeros((M, C), jnp.float32)
    for dy in range(3):
        for dx in range(3):
            xs = win[0, dy:dy + TH, dx:dx + W, :].reshape(M, C)
            acc = acc + jnp.dot(xs, w[dy, dx], preferred_element_type=jnp.float32)
    return acc  # (M, C) f32


# ----------------------------------------------------------------------------
# Pass 1: conv (discarded) -> per-tile per-channel (mean, M2) partials.
# ----------------------------------------------------------------------------
def _conv_stats_kernel(xm_ref, xt_ref, xb_ref, w_ref, stats_ref):
    _, TH, W, C = xm_ref.shape
    M = TH * W
    w = w_ref[...]
    win = _build_window(xm_ref, xt_ref, xb_ref, w.dtype)
    acc = _conv3x3(win, w, TH, W, C)                          # (M, C) f32

    tile_mean = jnp.sum(acc, axis=0) * (1.0 / M)              # (C,)
    d = acc - tile_mean[None, :]
    tile_m2 = jnp.sum(d * d, axis=0)                          # (C,)
    stats_ref[0, 0, :, :] = jnp.stack([tile_mean, tile_m2], axis=0)


# ----------------------------------------------------------------------------
# Pass 2: re-run conv, fuse scale/shift + residual + ReLU (single HBM write).
# ----------------------------------------------------------------------------
def _conv_bn_res_relu_kernel(xm_ref, xt_ref, xb_ref, w_ref, mid_ref,
                             scale_ref, shift_ref, o_ref):
    _, TH, W, C = xm_ref.shape
    w = w_ref[...]
    win = _build_window(xm_ref, xt_ref, xb_ref, w.dtype)
    conv = _conv3x3(win, w, TH, W, C).reshape(1, TH, W, C)    # f32
    y = conv * scale_ref[0, :] + shift_ref[0, :] + mid_ref[...].astype(jnp.float32)
    o_ref[...] = jnp.maximum(y, 0.0).astype(o_ref.dtype)


# ----------------------------------------------------------------------------
# NHWC entry point (preferred: no layout round trips).
# ----------------------------------------------------------------------------
@functools.partial(jax.jit, static_argnames=("tile_h", "compute_dtype"))
def localnet_residual_block_nhwc(x_nhwc, mid_nhwc, w_hwio, gamma, beta,
                                 *, tile_h=None, compute_dtype=jnp.bfloat16):
    """x_nhwc, mid_nhwc: (N, H, W, C).  Returns (N, H, W, C) in x's dtype."""
    N, H, W, C = x_nhwc.shape
    if tile_h is None:
        tile_h = _choose_tile_h(H, W, C, _VMEM_LIMIT_BYTES, N=N)
    assert H % tile_h == 0, f"tile_h={tile_h} must divide H={H}"
    n_h = H // tile_h

    w = w_hwio.astype(compute_dtype)  # tiny; the only pre-kernel cast

    # Shared BlockSpecs: unpadded x tile plus clamped 1-row halos above / below.
    x_main_spec = pl.BlockSpec((1, tile_h, W, C), lambda n, i: (n, i, 0, 0))
    x_top_spec = pl.BlockSpec(
        (1, 1, W, C), lambda n, i: (n, jnp.maximum(i * tile_h - 1, 0), 0, 0))
    x_bot_spec = pl.BlockSpec(
        (1, 1, W, C), lambda n, i: (n, jnp.minimum(i * tile_h + tile_h, H - 1), 0, 0))
    w_spec = pl.BlockSpec((3, 3, C, C), lambda n, i: (0, 0, 0, 0))

    x_item = int(jnp.dtype(x_nhwc.dtype).itemsize)
    mid_item = int(jnp.dtype(mid_nhwc.dtype).itemsize)
    conv_flops = int(2 * 9 * C * C * N * H * W)
    x_bytes = int(N * H * W * C * x_item + 2 * N * n_h * W * C * x_item)

    # -------- Pass 1: BN partial statistics only (no conv writeback). --------
    stats = pl.pallas_call(
        _conv_stats_kernel,
        out_shape=jax.ShapeDtypeStruct((N, n_h, 2, C), jnp.float32),
        grid_spec=pltpu.PrefetchScalarGridSpec(
            num_scalar_prefetch=0,
            grid=(N, n_h),
            in_specs=[x_main_spec, x_top_spec, x_bot_spec, w_spec],
            out_specs=pl.BlockSpec((1, 1, 2, C), lambda n, i: (n, i, 0, 0))),
        compiler_params=pltpu.CompilerParams(
            dimension_semantics=("parallel", "parallel"),
            vmem_limit_bytes=_VMEM_LIMIT_BYTES),
        cost_estimate=pl.CostEstimate(
            flops=conv_flops, transcendentals=0,
            bytes_accessed=x_bytes + int(9 * C * C * 2 + N * n_h * 2 * C * 4)),
    )(x_nhwc, x_nhwc, x_nhwc, w)

    # Finalize BN statistics (Chan's parallel-variance combine; biased variance).
    tile_mean = stats[:, :, 0, :]                             # (N, n_h, C)
    tile_m2 = stats[:, :, 1, :]                               # (N, n_h, C)
    mean = jnp.mean(tile_mean, axis=(0, 1))                   # equal tile counts
    m_tile = float(tile_h * W)
    total = float(N * H * W)
    var = (jnp.sum(tile_m2, axis=(0, 1))
           + m_tile * jnp.sum((tile_mean - mean[None, None, :]) ** 2, axis=(0, 1))
           ) / total
    var = jnp.maximum(var, 0.0)
    inv_std = jax.lax.rsqrt(var + EPS)
    scale = (gamma.astype(jnp.float32) * inv_std).reshape(1, C)
    shift = (beta.astype(jnp.float32) - mean * scale[0]).reshape(1, C)

    # -------- Pass 2: conv recompute + scale/shift + residual + ReLU. --------
    p2_bytes = x_bytes + int(N * H * W * C * (mid_item + x_item) + 4 * C * 4)
    out_nhwc = pl.pallas_call(
        _conv_bn_res_relu_kernel,
        out_shape=jax.ShapeDtypeStruct((N, H, W, C), x_nhwc.dtype),
        grid_spec=pltpu.PrefetchScalarGridSpec(
            num_scalar_prefetch=0,
            grid=(N, n_h),
            in_specs=[x_main_spec, x_top_spec, x_bot_spec, w_spec,
                      pl.BlockSpec((1, tile_h, W, C), lambda n, i: (n, i, 0, 0)),
                      pl.BlockSpec((1, C), lambda n, i: (0, 0)),
                      pl.BlockSpec((1, C), lambda n, i: (0, 0))],
            out_specs=pl.BlockSpec((1, tile_h, W, C), lambda n, i: (n, i, 0, 0))),
        compiler_params=pltpu.CompilerParams(
            dimension_semantics=("parallel", "parallel"),
            vmem_limit_bytes=_VMEM_LIMIT_BYTES),
        cost_estimate=pl.CostEstimate(
            flops=conv_flops + int(4 * N * H * W * C), transcendentals=0,
            bytes_accessed=p2_bytes),
    )(x_nhwc, x_nhwc, x_nhwc, w, mid_nhwc, scale, shift)

    return out_nhwc


# ----------------------------------------------------------------------------
# NCHW public wrapper (PyTorch layout).
# ----------------------------------------------------------------------------
@functools.partial(jax.jit, static_argnames=("tile_h", "compute_dtype"))
def localnet_residual_block(x_nchw, mid_nchw, w_hwio, gamma, beta,
                            *, tile_h=None, compute_dtype=jnp.bfloat16):
    """x_nchw, mid_nchw: (N, C, H, W).  Returns (N, C, H, W)."""
    x_nhwc = jnp.transpose(x_nchw, (0, 2, 3, 1))
    mid_nhwc = jnp.transpose(mid_nchw, (0, 2, 3, 1))
    out_nhwc = localnet_residual_block_nhwc(
        x_nhwc, mid_nhwc, w_hwio, gamma, beta,
        tile_h=tile_h, compute_dtype=compute_dtype)
    return jnp.transpose(out_nhwc, (0, 3, 1, 2))


# ----------------------------------------------------------------------------
# Pure-JAX reference mirroring the PyTorch forward (training-mode BN).
# ----------------------------------------------------------------------------
def _reference(x_nchw, mid_nchw, w_hwio, gamma, beta, conv_dtype=jnp.float32):
    w_oihw = jnp.transpose(w_hwio, (3, 2, 0, 1)).astype(conv_dtype)
    conv = jax.lax.conv_general_dilated(
        x_nchw.astype(conv_dtype), w_oihw, window_strides=(1, 1),
        padding=((1, 1), (1, 1)),
        dimension_numbers=("NCHW", "OIHW", "NCHW"),
        preferred_element_type=jnp.float32)
    mean = jnp.mean(conv, axis=(0, 2, 3), keepdims=True)
    var = jnp.mean((conv - mean) ** 2, axis=(0, 2, 3), keepdims=True)
    normed = (conv - mean) * jax.lax.rsqrt(var + EPS)
    normed = normed * gamma.reshape(1, -1, 1, 1) + beta.reshape(1, -1, 1, 1)
    return jnp.maximum(normed + mid_nchw, 0.0)


if __name__ == "__main__":
    N, C, H, W = 2, 4, 16, 16  # in_channels == out_channels == C

    key = jax.random.PRNGKey(0)
    kx, km, kw, kg, kb = jax.random.split(key, 5)

    x = jax.random.normal(kx, (N, C, H, W), jnp.float32)
    mid = jax.random.normal(km, (N, C, H, W), jnp.float32)

    # Deterministic synthetic parameters:
    #   conv weight (HWIO) ~ N(0, 0.1), BN gamma ~ U(0.5, 1.5), BN beta ~ N(0, 0.1)
    w_hwio = 0.1 * jax.random.normal(kw, (3, 3, C, C), jnp.float32)
    gamma = 0.5 + jax.random.uniform(kg, (C,), jnp.float32)
    beta = 0.1 * jax.random.normal(kb, (C,), jnp.float32)

    # tile_h=8 exercises the multi-tile halo/boundary-masking path
    # (grid = (2 batches, 2 row tiles)).
    out = localnet_residual_block(x, mid, w_hwio, gamma, beta, tile_h=8)
    out = jax.block_until_ready(out)
    assert out.shape == (N, C, H, W)

    # Tight check against a reference with matching mixed precision
    # (bf16 matmul inputs, f32 accumulation / BN / residual / ReLU).
    ref_bf16 = _reference(x, mid, w_hwio, gamma, beta, conv_dtype=jnp.bfloat16)
    assert jnp.allclose(out, ref_bf16, atol=5e-3, rtol=5e-3), \
        "mismatch vs bf16-conv reference"

    # Sanity check against the full-f32 (exact PyTorch-equivalent) reference.
    ref_f32 = _reference(x, mid, w_hwio, gamma, beta, conv_dtype=jnp.float32)
    assert jnp.allclose(out, ref_f32, atol=5e-2, rtol=5e-2), \
        "mismatch vs f32 reference"

    # Full-f32 compute path with automatic (generation-aware) tile selection.
    out_f32 = localnet_residual_block(x, mid, w_hwio, gamma, beta,
                                      compute_dtype=jnp.float32)
    out_f32 = jax.block_until_ready(out_f32)
    assert jnp.allclose(out_f32, ref_f32, atol=1e-3, rtol=1e-3), \
        "mismatch vs f32 reference (f32 compute path)"

    print("KERNEL_OK")
</pallas_src>

<mosaic_0001>
module attributes {stable_mosaic.version = 11 : i64} {
  func.func @_conv_stats_kernel(%arg0: i32, %arg1: i32, %arg2: memref<1x8x16x4xf32, #tpu.memory_space<vmem>>, %arg3: memref<1x1x16x4xf32, #tpu.memory_space<vmem>>, %arg4: memref<1x1x16x4xf32, #tpu.memory_space<vmem>>, %arg5: memref<3x3x4x4xbf16, #tpu.memory_space<vmem>>, %arg6: memref<1x1x2x4xf32, #tpu.memory_space<vmem>>) attributes {dimension_semantics = [#tpu.dimension_semantics<parallel>, #tpu.dimension_semantics<parallel>], iteration_bounds = array<i64: 2, 2>, scalar_prefetch = 0 : i64, scratch_operands = 0 : i64, tpu.core_type = #tpu.core_type<tc>, window_params = [{transform_indices = @transform_0, window_bounds = array<i64: 1, 8, 16, 4>}, {transform_indices = @transform_1, window_bounds = array<i64: 1, 1, 16, 4>}, {transform_indices = @transform_2, window_bounds = array<i64: 1, 1, 16, 4>}, {pipeline_mode = #tpu.pipeline_mode<synchronous>, transform_indices = @transform_3, window_bounds = array<i64: 3, 3, 4, 4>}, {transform_indices = @transform_4, window_bounds = array<i64: 1, 1, 2, 4>}]} {
    %c0 = arith.constant 0 : index
    %c0_0 = arith.constant 0 : index
    %c0_1 = arith.constant 0 : index
    %c0_2 = arith.constant 0 : index
    %0 = vector.load %arg5[%c0, %c0_0, %c0_1, %c0_2] : memref<3x3x4x4xbf16, #tpu.memory_space<vmem>>, vector<3x3x4x4xbf16>
    %c0_3 = arith.constant 0 : index
    %c0_4 = arith.constant 0 : index
    %c0_5 = arith.constant 0 : index
    %c0_6 = arith.constant 0 : index
    %1 = vector.load %arg3[%c0_3, %c0_4, %c0_5, %c0_6] : memref<1x1x16x4xf32, #tpu.memory_space<vmem>>, vector<1x1x16x4xf32>
    %2 = arith.truncf %1 : vector<1x1x16x4xf32> to vector<1x1x16x4xbf16>
    %c0_i32 = arith.constant 0 : i32
    %3 = arith.cmpi sgt, %arg1, %c0_i32 : i32
    %4 = arith.extui %3 : i1 to i32
    %5 = arith.sitofp %4 : i32 to f32
    %6 = arith.truncf %5 : f32 to bf16
    %7 = vector.broadcast %6 : bf16 to vector<1x1x16x4xbf16>
    %8 = arith.mulf %2, %7 : vector<1x1x16x4xbf16>
    %c0_7 = arith.constant 0 : index
    %c0_8 = arith.constant 0 : index
    %c0_9 = arith.constant 0 : index
    %c0_10 = arith.constant 0 : index
    %9 = vector.load %arg4[%c0_7, %c0_8, %c0_9, %c0_10] : memref<1x1x16x4xf32, #tpu.memory_space<vmem>>, vector<1x1x16x4xf32>
    %10 = arith.truncf %9 : vector<1x1x16x4xf32> to vector<1x1x16x4xbf16>
    %c1_i32 = arith.constant 1 : i32
    %11 = arith.cmpi slt, %arg1, %c1_i32 : i32
    %12 = arith.extui %11 : i1 to i32
    %13 = arith.sitofp %12 : i32 to f32
    %14 = arith.truncf %13 : f32 to bf16
    %15 = vector.broadcast %14 : bf16 to vector<1x1x16x4xbf16>
    %16 = arith.mulf %10, %15 : vector<1x1x16x4xbf16>
    %c0_11 = arith.constant 0 : index
    %c0_12 = arith.constant 0 : index
    %c0_13 = arith.constant 0 : index
    %c0_14 = arith.constant 0 : index
    %17 = vector.load %arg2[%c0_11, %c0_12, %c0_13, %c0_14] : memref<1x8x16x4xf32, #tpu.memory_space<vmem>>, vector<1x8x16x4xf32>
    %18 = arith.truncf %17 : vector<1x8x16x4xf32> to vector<1x8x16x4xbf16>
    %19 = tpu.concatenate %8, %18, %16 in 1 : vector<1x1x16x4xbf16>, vector<1x8x16x4xbf16>, vector<1x1x16x4xbf16> -> vector<1x10x16x4xbf16>
    %cst = arith.constant 0.000000e+00 : bf16
    %20 = vector.broadcast %cst : bf16 to vector<1x10x1x4xbf16>
    %21 = tpu.concatenate %20, %19, %20 in 2 : vector<1x10x1x4xbf16>, vector<1x10x16x4xbf16>, vector<1x10x1x4xbf16> -> vector<1x10x18x4xbf16>
    %cst_15 = arith.constant 0.000000e+00 : f32
    %22 = vector.broadcast %cst_15 : f32 to vector<128x4xf32>
    %23 = vector.extract_strided_slice %21 {offsets = [0, 0, 0, 0], sizes = [1, 8, 16, 4], strides = [1, 1, 1, 1]} : vector<1x10x18x4xbf16> to vector<1x8x16x4xbf16>
    %24 = vector.shape_cast %23 : vector<1x8x16x4xbf16> to vector<8x16x4xbf16>
    %25 = vector.shape_cast %24 : vector<8x16x4xbf16> to vector<128x4xbf16>
    %26 = vector.extract_strided_slice %0 {offsets = [0, 0, 0, 0], sizes = [1, 1, 4, 4], strides = [1, 1, 1, 1]} : vector<3x3x4x4xbf16> to vector<1x1x4x4xbf16>
    %27 = vector.shape_cast %26 : vector<1x1x4x4xbf16> to vector<4x4xbf16>
    %cst_16 = arith.constant dense<0.000000e+00> : vector<128x4xf32>
    %28 = tpu.matmul %25, %27, %cst_16 {dimension_numbers = #tpu.dot_dimension_numbers<[1], [0], [0], [1], [0, 0, 1, 1], [], []>} : vector<128x4xbf16>, vector<4x4xbf16>, vector<128x4xf32> -> vector<128x4xf32>
    %29 = arith.addf %22, %28 : vector<128x4xf32>
    %30 = vector.extract_strided_slice %21 {offsets = [0, 0, 1, 0], sizes = [1, 8, 16, 4], strides = [1, 1, 1, 1]} : vector<1x10x18x4xbf16> to vector<1x8x16x4xbf16>
    %31 = vector.shape_cast %30 : vector<1x8x16x4xbf16> to vector<8x16x4xbf16>
    %32 = vector.shape_cast %31 : vector<8x16x4xbf16> to vector<128x4xbf16>
    %33 = vector.extract_strided_slice %0 {offsets = [0, 1, 0, 0], sizes = [1, 1, 4, 4], strides = [1, 1, 1, 1]} : vector<3x3x4x4xbf16> to vector<1x1x4x4xbf16>
    %34 = vector.shape_cast %33 : vector<1x1x4x4xbf16> to vector<4x4xbf16>
    %cst_17 = arith.constant dense<0.000000e+00> : vector<128x4xf32>
    %35 = tpu.matmul %32, %34, %cst_17 {dimension_numbers = #tpu.dot_dimension_numbers<[1], [0], [0], [1], [0, 0, 1, 1], [], []>} : vector<128x4xbf16>, vector<4x4xbf16>, vector<128x4xf32> -> vector<128x4xf32>
    %36 = arith.addf %29, %35 : vector<128x4xf32>
    %37 = vector.extract_strided_slice %21 {offsets = [0, 0, 2, 0], sizes = [1, 8, 16, 4], strides = [1, 1, 1, 1]} : vector<1x10x18x4xbf16> to vector<1x8x16x4xbf16>
    %38 = vector.shape_cast %37 : vector<1x8x16x4xbf16> to vector<8x16x4xbf16>
    %39 = vector.shape_cast %38 : vector<8x16x4xbf16> to vector<128x4xbf16>
    %40 = vector.extract_strided_slice %0 {offsets = [0, 2, 0, 0], sizes = [1, 1, 4, 4], strides = [1, 1, 1, 1]} : vector<3x3x4x4xbf16> to vector<1x1x4x4xbf16>
    %41 = vector.shape_cast %40 : vector<1x1x4x4xbf16> to vector<4x4xbf16>
    %cst_18 = arith.constant dense<0.000000e+00> : vector<128x4xf32>
    %42 = tpu.matmul %39, %41, %cst_18 {dimension_numbers = #tpu.dot_dimension_numbers<[1], [0], [0], [1], [0, 0, 1, 1], [], []>} : vector<128x4xbf16>, vector<4x4xbf16>, vector<128x4xf32> -> vector<128x4xf32>
    %43 = arith.addf %36, %42 : vector<128x4xf32>
    %44 = vector.extract_strided_slice %21 {offsets = [0, 1, 0, 0], sizes = [1, 8, 16, 4], strides = [1, 1, 1, 1]} : vector<1x10x18x4xbf16> to vector<1x8x16x4xbf16>
    %45 = vector.shape_cast %44 : vector<1x8x16x4xbf16> to vector<8x16x4xbf16>
    %46 = vector.shape_cast %45 : vector<8x16x4xbf16> to vector<128x4xbf16>
    %47 = vector.extract_strided_slice %0 {offsets = [1, 0, 0, 0], sizes = [1, 1, 4, 4], strides = [1, 1, 1, 1]} : vector<3x3x4x4xbf16> to vector<1x1x4x4xbf16>
    %48 = vector.shape_cast %47 : vector<1x1x4x4xbf16> to vector<4x4xbf16>
    %cst_19 = arith.constant dense<0.000000e+00> : vector<128x4xf32>
    %49 = tpu.matmul %46, %48, %cst_19 {dimension_numbers = #tpu.dot_dimension_numbers<[1], [0], [0], [1], [0, 0, 1, 1], [], []>} : vector<128x4xbf16>, vector<4x4xbf16>, vector<128x4xf32> -> vector<128x4xf32>
    %50 = arith.addf %43, %49 : vector<128x4xf32>
    %51 = vector.extract_strided_slice %21 {offsets = [0, 1, 1, 0], sizes = [1, 8, 16, 4], strides = [1, 1, 1, 1]} : vector<1x10x18x4xbf16> to vector<1x8x16x4xbf16>
    %52 = vector.shape_cast %51 : vector<1x8x16x4xbf16> to vector<8x16x4xbf16>
    %53 = vector.shape_cast %52 : vector<8x16x4xbf16> to vector<128x4xbf16>
    %54 = vector.extract_strided_slice %0 {offsets = [1, 1, 0, 0], sizes = [1, 1, 4, 4], strides = [1, 1, 1, 1]} : vector<3x3x4x4xbf16> to vector<1x1x4x4xbf16>
    %55 = vector.shape_cast %54 : vector<1x1x4x4xbf16> to vector<4x4xbf16>
    %cst_20 = arith.constant dense<0.000000e+00> : vector<128x4xf32>
    %56 = tpu.matmul %53, %55, %cst_20 {dimension_numbers = #tpu.dot_dimension_numbers<[1], [0], [0], [1], [0, 0, 1, 1], [], []>} : vector<128x4xbf16>, vector<4x4xbf16>, vector<128x4xf32> -> vector<128x4xf32>
    %57 = arith.addf %50, %56 : vector<128x4xf32>
    %58 = vector.extract_strided_slice %21 {offsets = [0, 1, 2, 0], sizes = [1, 8, 16, 4], strides = [1, 1, 1, 1]} : vector<1x10x18x4xbf16> to vector<1x8x16x4xbf16>
    %59 = vector.shape_cast %58 : vector<1x8x16x4xbf16> to vector<8x16x4xbf16>
    %60 = vector.shape_cast %59 : vector<8x16x4xbf16> to vector<128x4xbf16>
    %61 = vector.extract_strided_slice %0 {offsets = [1, 2, 0, 0], sizes = [1, 1, 4, 4], strides = [1, 1, 1, 1]} : vector<3x3x4x4xbf16> to vector<1x1x4x4xbf16>
    %62 = vector.shape_cast %61 : vector<1x1x4x4xbf16> to vector<4x4xbf16>
    %cst_21 = arith.constant dense<0.000000e+00> : vector<128x4xf32>
    %63 = tpu.matmul %60, %62, %cst_21 {dimension_numbers = #tpu.dot_dimension_numbers<[1], [0], [0], [1], [0, 0, 1, 1], [], []>} : vector<128x4xbf16>, vector<4x4xbf16>, vector<128x4xf32> -> vector<128x4xf32>
    %64 = arith.addf %57, %63 : vector<128x4xf32>
    %65 = vector.extract_strided_slice %21 {offsets = [0, 2, 0, 0], sizes = [1, 8, 16, 4], strides = [1, 1, 1, 1]} : vector<1x10x18x4xbf16> to vector<1x8x16x4xbf16>
    %66 = vector.shape_cast %65 : vector<1x8x16x4xbf16> to vector<8x16x4xbf16>
    %67 = vector.shape_cast %66 : vector<8x16x4xbf16> to vector<128x4xbf16>
    %68 = vector.extract_strided_slice %0 {offsets = [2, 0, 0, 0], sizes = [1, 1, 4, 4], strides = [1, 1, 1, 1]} : vector<3x3x4x4xbf16> to vector<1x1x4x4xbf16>
    %69 = vector.shape_cast %68 : vector<1x1x4x4xbf16> to vector<4x4xbf16>
    %cst_22 = arith.constant dense<0.000000e+00> : vector<128x4xf32>
    %70 = tpu.matmul %67, %69, %cst_22 {dimension_numbers = #tpu.dot_dimension_numbers<[1], [0], [0], [1], [0, 0, 1, 1], [], []>} : vector<128x4xbf16>, vector<4x4xbf16>, vector<128x4xf32> -> vector<128x4xf32>
    %71 = arith.addf %64, %70 : vector<128x4xf32>
    %72 = vector.extract_strided_slice %21 {offsets = [0, 2, 1, 0], sizes = [1, 8, 16, 4], strides = [1, 1, 1, 1]} : vector<1x10x18x4xbf16> to vector<1x8x16x4xbf16>
    %73 = vector.shape_cast %72 : vector<1x8x16x4xbf16> to vector<8x16x4xbf16>
    %74 = vector.shape_cast %73 : vector<8x16x4xbf16> to vector<128x4xbf16>
    %75 = vector.extract_strided_slice %0 {offsets = [2, 1, 0, 0], sizes = [1, 1, 4, 4], strides = [1, 1, 1, 1]} : vector<3x3x4x4xbf16> to vector<1x1x4x4xbf16>
    %76 = vector.shape_cast %75 : vector<1x1x4x4xbf16> to vector<4x4xbf16>
    %cst_23 = arith.constant dense<0.000000e+00> : vector<128x4xf32>
    %77 = tpu.matmul %74, %76, %cst_23 {dimension_numbers = #tpu.dot_dimension_numbers<[1], [0], [0], [1], [0, 0, 1, 1], [], []>} : vector<128x4xbf16>, vector<4x4xbf16>, vector<128x4xf32> -> vector<128x4xf32>
    %78 = arith.addf %71, %77 : vector<128x4xf32>
    %79 = vector.extract_strided_slice %21 {offsets = [0, 2, 2, 0], sizes = [1, 8, 16, 4], strides = [1, 1, 1, 1]} : vector<1x10x18x4xbf16> to vector<1x8x16x4xbf16>
    %80 = vector.shape_cast %79 : vector<1x8x16x4xbf16> to vector<8x16x4xbf16>
    %81 = vector.shape_cast %80 : vector<8x16x4xbf16> to vector<128x4xbf16>
    %82 = vector.extract_strided_slice %0 {offsets = [2, 2, 0, 0], sizes = [1, 1, 4, 4], strides = [1, 1, 1, 1]} : vector<3x3x4x4xbf16> to vector<1x1x4x4xbf16>
    %83 = vector.shape_cast %82 : vector<1x1x4x4xbf16> to vector<4x4xbf16>
    %cst_24 = arith.constant dense<0.000000e+00> : vector<128x4xf32>
    %84 = tpu.matmul %81, %83, %cst_24 {dimension_numbers = #tpu.dot_dimension_numbers<[1], [0], [0], [1], [0, 0, 1, 1], [], []>} : vector<128x4xbf16>, vector<4x4xbf16>, vector<128x4xf32> -> vector<128x4xf32>
    %85 = arith.addf %78, %84 : vector<128x4xf32>
    %cst_25 = arith.constant dense<0.000000e+00> : vector<4xf32>
    %86 = vector.multi_reduction <add>, %85, %cst_25 [0] : vector<128x4xf32> to vector<4xf32>
    %cst_26 = arith.constant 7.812500e-03 : f32
    %87 = vector.broadcast %cst_26 : f32 to vector<4xf32>
    %88 = arith.mulf %86, %87 : vector<4xf32>
    %89 = vector.shape_cast %88 : vector<4xf32> to vector<1x4xf32>
    %90 = vector.broadcast %89 : vector<1x4xf32> to vector<128x4xf32>
    %91 = arith.subf %85, %90 : vector<128x4xf32>
    %92 = arith.mulf %91, %91 : vector<128x4xf32>
    %cst_27 = arith.constant dense<0.000000e+00> : vector<4xf32>
    %93 = vector.multi_reduction <add>, %92, %cst_27 [0] : vector<128x4xf32> to vector<4xf32>
    %94 = vector.shape_cast %88 : vector<4xf32> to vector<1x4xf32>
    %95 = vector.shape_cast %93 : vector<4xf32> to vector<1x4xf32>
    %96 = tpu.concatenate %94, %95 in 0 : vector<1x4xf32>, vector<1x4xf32> -> vector<2x4xf32>
    %c0_28 = arith.constant 0 : index
    %c0_29 = arith.constant 0 : index
    %c0_30 = arith.constant 0 : index
    %c0_31 = arith.constant 0 : index
    %97 = vector.load %arg6[%c0_28, %c0_29, %c0_30, %c0_31] : memref<1x1x2x4xf32, #tpu.memory_space<vmem>>, vector<1x1x2x4xf32>
    %98 = vector.shape_cast %97 : vector<1x1x2x4xf32> to vector<2x4xf32>
    %99 = vector.shape_cast %96 : vector<2x4xf32> to vector<1x1x2x4xf32>
    tpu.vector_store %arg6[%c0_28, %c0_29, %c0_30, %c0_31], %99 {strides = array<i32>} : memref<1x1x2x4xf32, #tpu.memory_space<vmem>>, vector<1x1x2x4xf32>,
    return
  }
  func.func @transform_0(%arg0: i32, %arg1: i32) -> (i32, i32, i32, i32) {
    %c0_i32 = arith.constant 0 : i32
    %c0_i32_0 = arith.constant 0 : i32
    %c0_i32_1 = arith.constant 0 : i32
    return %arg0, %arg1, %c0_i32, %c0_i32_0 : i32, i32, i32, i32
  }
  func.func @transform_1(%arg0: i32, %arg1: i32) -> (i32, i32, i32, i32) {
    %c8_i32 = arith.constant 8 : i32
    %0 = arith.muli %arg1, %c8_i32 : i32
    %c1_i32 = arith.constant 1 : i32
    %1 = arith.subi %0, %c1_i32 : i32
    %c0_i32 = arith.constant 0 : i32
    %2 = arith.maxsi %1, %c0_i32 : i32
    %c0_i32_0 = arith.constant 0 : i32
    %c0_i32_1 = arith.constant 0 : i32
    %c0_i32_2 = arith.constant 0 : i32
    return %arg0, %2, %c0_i32_0, %c0_i32_1 : i32, i32, i32, i32
  }
  func.func @transform_2(%arg0: i32, %arg1: i32) -> (i32, i32, i32, i32) {
    %c8_i32 = arith.constant 8 : i32
    %0 = arith.muli %arg1, %c8_i32 : i32
    %c8_i32_0 = arith.constant 8 : i32
    %1 = arith.addi %0, %c8_i32_0 : i32
    %c15_i32 = arith.constant 15 : i32
    %2 = arith.minsi %1, %c15_i32 : i32
    %c0_i32 = arith.constant 0 : i32
    %c0_i32_1 = arith.constant 0 : i32
    %c0_i32_2 = arith.constant 0 : i32
    return %arg0, %2, %c0_i32, %c0_i32_1 : i32, i32, i32, i32
  }
  func.func @transform_3(%arg0: i32, %arg1: i32) -> (i32, i32, i32, i32) {
    %c0_i32 = arith.constant 0 : i32
    %c0_i32_0 = arith.constant 0 : i32
    %c0_i32_1 = arith.constant 0 : i32
    %c0_i32_2 = arith.constant 0 : i32
    %c0_i32_3 = arith.constant 0 : i32
    return %c0_i32, %c0_i32_0, %c0_i32_1, %c0_i32_2 : i32, i32, i32, i32
  }
  func.func @transform_4(%arg0: i32, %arg1: i32) -> (i32, i32, i32, i32) {
    %c0_i32 = arith.constant 0 : i32
    %c0_i32_0 = arith.constant 0 : i32
    %c0_i32_1 = arith.constant 0 : i32
    return %arg0, %arg1, %c0_i32, %c0_i32_0 : i32, i32, i32, i32
  }
}

module attributes {stable_mosaic.version = 11 : i64} {
  func.func @_conv_bn_res_relu_kernel(%arg0: i32, %arg1: i32, %arg2: memref<1x8x16x4xf32, #tpu.memory_space<vmem>>, %arg3: memref<1x1x16x4xf32, #tpu.memory_space<vmem>>, %arg4: memref<1x1x16x4xf32, #tpu.memory_space<vmem>>, %arg5: memref<3x3x4x4xbf16, #tpu.memory_space<vmem>>, %arg6: memref<1x8x16x4xf32, #tpu.memory_space<vmem>>, %arg7: memref<1x4xf32, #tpu.memory_space<vmem>>, %arg8: memref<1x4xf32, #tpu.memory_space<vmem>>, %arg9: memref<1x8x16x4xf32, #tpu.memory_space<vmem>>) attributes {dimension_semantics = [#tpu.dimension_semantics<parallel>, #tpu.dimension_semantics<parallel>], iteration_bounds = array<i64: 2, 2>, scalar_prefetch = 0 : i64, scratch_operands = 0 : i64, tpu.core_type = #tpu.core_type<tc>, window_params = [{transform_indices = @transform_0, window_bounds = array<i64: 1, 8, 16, 4>}, {transform_indices = @transform_1, window_bounds = array<i64: 1, 1, 16, 4>}, {transform_indices = @transform_2, window_bounds = array<i64: 1, 1, 16, 4>}, {pipeline_mode = #tpu.pipeline_mode<synchronous>, transform_indices = @transform_3, window_bounds = array<i64: 3, 3, 4, 4>}, {transform_indices = @transform_4, window_bounds = array<i64: 1, 8, 16, 4>}, {pipeline_mode = #tpu.pipeline_mode<synchronous>, transform_indices = @transform_5, window_bounds = array<i64: 1, 4>}, {pipeline_mode = #tpu.pipeline_mode<synchronous>, transform_indices = @transform_6, window_bounds = array<i64: 1, 4>}, {transform_indices = @transform_7, window_bounds = array<i64: 1, 8, 16, 4>}]} {
    %c0 = arith.constant 0 : index
    %c0_0 = arith.constant 0 : index
    %c0_1 = arith.constant 0 : index
    %c0_2 = arith.constant 0 : index
    %0 = vector.load %arg5[%c0, %c0_0, %c0_1, %c0_2] : memref<3x3x4x4xbf16, #tpu.memory_space<vmem>>, vector<3x3x4x4xbf16>
    %c0_3 = arith.constant 0 : index
    %c0_4 = arith.constant 0 : index
    %c0_5 = arith.constant 0 : index
    %c0_6 = arith.constant 0 : index
    %1 = vector.load %arg3[%c0_3, %c0_4, %c0_5, %c0_6] : memref<1x1x16x4xf32, #tpu.memory_space<vmem>>, vector<1x1x16x4xf32>
    %2 = arith.truncf %1 : vector<1x1x16x4xf32> to vector<1x1x16x4xbf16>
    %c0_i32 = arith.constant 0 : i32
    %3 = arith.cmpi sgt, %arg1, %c0_i32 : i32
    %4 = arith.extui %3 : i1 to i32
    %5 = arith.sitofp %4 : i32 to f32
    %6 = arith.truncf %5 : f32 to bf16
    %7 = vector.broadcast %6 : bf16 to vector<1x1x16x4xbf16>
    %8 = arith.mulf %2, %7 : vector<1x1x16x4xbf16>
    %c0_7 = arith.constant 0 : index
    %c0_8 = arith.constant 0 : index
    %c0_9 = arith.constant 0 : index
    %c0_10 = arith.constant 0 : index
    %9 = vector.load %arg4[%c0_7, %c0_8, %c0_9, %c0_10] : memref<1x1x16x4xf32, #tpu.memory_space<vmem>>, vector<1x1x16x4xf32>
    %10 = arith.truncf %9 : vector<1x1x16x4xf32> to vector<1x1x16x4xbf16>
    %c1_i32 = arith.constant 1 : i32
    %11 = arith.cmpi slt, %arg1, %c1_i32 : i32
    %12 = arith.extui %11 : i1 to i32
    %13 = arith.sitofp %12 : i32 to f32
    %14 = arith.truncf %13 : f32 to bf16
    %15 = vector.broadcast %14 : bf16 to vector<1x1x16x4xbf16>
    %16 = arith.mulf %10, %15 : vector<1x1x16x4xbf16>
    %c0_11 = arith.constant 0 : index
    %c0_12 = arith.constant 0 : index
    %c0_13 = arith.constant 0 : index
    %c0_14 = arith.constant 0 : index
    %17 = vector.load %arg2[%c0_11, %c0_12, %c0_13, %c0_14] : memref<1x8x16x4xf32, #tpu.memory_space<vmem>>, vector<1x8x16x4xf32>
    %18 = arith.truncf %17 : vector<1x8x16x4xf32> to vector<1x8x16x4xbf16>
    %19 = tpu.concatenate %8, %18, %16 in 1 : vector<1x1x16x4xbf16>, vector<1x8x16x4xbf16>, vector<1x1x16x4xbf16> -> vector<1x10x16x4xbf16>
    %cst = arith.constant 0.000000e+00 : bf16
    %20 = vector.broadcast %cst : bf16 to vector<1x10x1x4xbf16>
    %21 = tpu.concatenate %20, %19, %20 in 2 : vector<1x10x1x4xbf16>, vector<1x10x16x4xbf16>, vector<1x10x1x4xbf16> -> vector<1x10x18x4xbf16>
    %cst_15 = arith.constant 0.000000e+00 : f32
    %22 = vector.broadcast %cst_15 : f32 to vector<128x4xf32>
    %23 = vector.extract_strided_slice %21 {offsets = [0, 0, 0, 0], sizes = [1, 8, 16, 4], strides = [1, 1, 1, 1]} : vector<1x10x18x4xbf16> to vector<1x8x16x4xbf16>
    %24 = vector.shape_cast %23 : vector<1x8x16x4xbf16> to vector<8x16x4xbf16>
    %25 = vector.shape_cast %24 : vector<8x16x4xbf16> to vector<128x4xbf16>
    %26 = vector.extract_strided_slice %0 {offsets = [0, 0, 0, 0], sizes = [1, 1, 4, 4], strides = [1, 1, 1, 1]} : vector<3x3x4x4xbf16> to vector<1x1x4x4xbf16>
    %27 = vector.shape_cast %26 : vector<1x1x4x4xbf16> to vector<4x4xbf16>
    %cst_16 = arith.constant dense<0.000000e+00> : vector<128x4xf32>
    %28 = tpu.matmul %25, %27, %cst_16 {dimension_numbers = #tpu.dot_dimension_numbers<[1], [0], [0], [1], [0, 0, 1, 1], [], []>} : vector<128x4xbf16>, vector<4x4xbf16>, vector<128x4xf32> -> vector<128x4xf32>
    %29 = arith.addf %22, %28 : vector<128x4xf32>
    %30 = vector.extract_strided_slice %21 {offsets = [0, 0, 1, 0], sizes = [1, 8, 16, 4], strides = [1, 1, 1, 1]} : vector<1x10x18x4xbf16> to vector<1x8x16x4xbf16>
    %31 = vector.shape_cast %30 : vector<1x8x16x4xbf16> to vector<8x16x4xbf16>
    %32 = vector.shape_cast %31 : vector<8x16x4xbf16> to vector<128x4xbf16>
    %33 = vector.extract_strided_slice %0 {offsets = [0, 1, 0, 0], sizes = [1, 1, 4, 4], strides = [1, 1, 1, 1]} : vector<3x3x4x4xbf16> to vector<1x1x4x4xbf16>
    %34 = vector.shape_cast %33 : vector<1x1x4x4xbf16> to vector<4x4xbf16>
    %cst_17 = arith.constant dense<0.000000e+00> : vector<128x4xf32>
    %35 = tpu.matmul %32, %34, %cst_17 {dimension_numbers = #tpu.dot_dimension_numbers<[1], [0], [0], [1], [0, 0, 1, 1], [], []>} : vector<128x4xbf16>, vector<4x4xbf16>, vector<128x4xf32> -> vector<128x4xf32>
    %36 = arith.addf %29, %35 : vector<128x4xf32>
    %37 = vector.extract_strided_slice %21 {offsets = [0, 0, 2, 0], sizes = [1, 8, 16, 4], strides = [1, 1, 1, 1]} : vector<1x10x18x4xbf16> to vector<1x8x16x4xbf16>
    %38 = vector.shape_cast %37 : vector<1x8x16x4xbf16> to vector<8x16x4xbf16>
    %39 = vector.shape_cast %38 : vector<8x16x4xbf16> to vector<128x4xbf16>
    %40 = vector.extract_strided_slice %0 {offsets = [0, 2, 0, 0], sizes = [1, 1, 4, 4], strides = [1, 1, 1, 1]} : vector<3x3x4x4xbf16> to vector<1x1x4x4xbf16>
    %41 = vector.shape_cast %40 : vector<1x1x4x4xbf16> to vector<4x4xbf16>
    %cst_18 = arith.constant dense<0.000000e+00> : vector<128x4xf32>
    %42 = tpu.matmul %39, %41, %cst_18 {dimension_numbers = #tpu.dot_dimension_numbers<[1], [0], [0], [1], [0, 0, 1, 1], [], []>} : vector<128x4xbf16>, vector<4x4xbf16>, vector<128x4xf32> -> vector<128x4xf32>
    %43 = arith.addf %36, %42 : vector<128x4xf32>
    %44 = vector.extract_strided_slice %21 {offsets = [0, 1, 0, 0], sizes = [1, 8, 16, 4], strides = [1, 1, 1, 1]} : vector<1x10x18x4xbf16> to vector<1x8x16x4xbf16>
    %45 = vector.shape_cast %44 : vector<1x8x16x4xbf16> to vector<8x16x4xbf16>
    %46 = vector.shape_cast %45 : vector<8x16x4xbf16> to vector<128x4xbf16>
    %47 = vector.extract_strided_slice %0 {offsets = [1, 0, 0, 0], sizes = [1, 1, 4, 4], strides = [1, 1, 1, 1]} : vector<3x3x4x4xbf16> to vector<1x1x4x4xbf16>
    %48 = vector.shape_cast %47 : vector<1x1x4x4xbf16> to vector<4x4xbf16>
    %cst_19 = arith.constant dense<0.000000e+00> : vector<128x4xf32>
    %49 = tpu.matmul %46, %48, %cst_19 {dimension_numbers = #tpu.dot_dimension_numbers<[1], [0], [0], [1], [0, 0, 1, 1], [], []>} : vector<128x4xbf16>, vector<4x4xbf16>, vector<128x4xf32> -> vector<128x4xf32>
    %50 = arith.addf %43, %49 : vector<128x4xf32>
    %51 = vector.extract_strided_slice %21 {offsets = [0, 1, 1, 0], sizes = [1, 8, 16, 4], strides = [1, 1, 1, 1]} : vector<1x10x18x4xbf16> to vector<1x8x16x4xbf16>
    %52 = vector.shape_cast %51 : vector<1x8x16x4xbf16> to vector<8x16x4xbf16>
    %53 = vector.shape_cast %52 : vector<8x16x4xbf16> to vector<128x4xbf16>
    %54 = vector.extract_strided_slice %0 {offsets = [1, 1, 0, 0], sizes = [1, 1, 4, 4], strides = [1, 1, 1, 1]} : vector<3x3x4x4xbf16> to vector<1x1x4x4xbf16>
    %55 = vector.shape_cast %54 : vector<1x1x4x4xbf16> to vector<4x4xbf16>
    %cst_20 = arith.constant dense<0.000000e+00> : vector<128x4xf32>
    %56 = tpu.matmul %53, %55, %cst_20 {dimension_numbers = #tpu.dot_dimension_numbers<[1], [0], [0], [1], [0, 0, 1, 1], [], []>} : vector<128x4xbf16>, vector<4x4xbf16>, vector<128x4xf32> -> vector<128x4xf32>
    %57 = arith.addf %50, %56 : vector<128x4xf32>
    %58 = vector.extract_strided_slice %21 {offsets = [0, 1, 2, 0], sizes = [1, 8, 16, 4], strides = [1, 1, 1, 1]} : vector<1x10x18x4xbf16> to vector<1x8x16x4xbf16>
    %59 = vector.shape_cast %58 : vector<1x8x16x4xbf16> to vector<8x16x4xbf16>
    %60 = vector.shape_cast %59 : vector<8x16x4xbf16> to vector<128x4xbf16>
    %61 = vector.extract_strided_slice %0 {offsets = [1, 2, 0, 0], sizes = [1, 1, 4, 4], strides = [1, 1, 1, 1]} : vector<3x3x4x4xbf16> to vector<1x1x4x4xbf16>
    %62 = vector.shape_cast %61 : vector<1x1x4x4xbf16> to vector<4x4xbf16>
    %cst_21 = arith.constant dense<0.000000e+00> : vector<128x4xf32>
    %63 = tpu.matmul %60, %62, %cst_21 {dimension_numbers = #tpu.dot_dimension_numbers<[1], [0], [0], [1], [0, 0, 1, 1], [], []>} : vector<128x4xbf16>, vector<4x4xbf16>, vector<128x4xf32> -> vector<128x4xf32>
    %64 = arith.addf %57, %63 : vector<128x4xf32>
    %65 = vector.extract_strided_slice %21 {offsets = [0, 2, 0, 0], sizes = [1, 8, 16, 4], strides = [1, 1, 1, 1]} : vector<1x10x18x4xbf16> to vector<1x8x16x4xbf16>
    %66 = vector.shape_cast %65 : vector<1x8x16x4xbf16> to vector<8x16x4xbf16>
    %67 = vector.shape_cast %66 : vector<8x16x4xbf16> to vector<128x4xbf16>
    %68 = vector.extract_strided_slice %0 {offsets = [2, 0, 0, 0], sizes = [1, 1, 4, 4], strides = [1, 1, 1, 1]} : vector<3x3x4x4xbf16> to vector<1x1x4x4xbf16>
    %69 = vector.shape_cast %68 : vector<1x1x4x4xbf16> to vector<4x4xbf16>
    %cst_22 = arith.constant dense<0.000000e+00> : vector<128x4xf32>
    %70 = tpu.matmul %67, %69, %cst_22 {dimension_numbers = #tpu.dot_dimension_numbers<[1], [0], [0], [1], [0, 0, 1, 1], [], []>} : vector<128x4xbf16>, vector<4x4xbf16>, vector<128x4xf32> -> vector<128x4xf32>
    %71 = arith.addf %64, %70 : vector<128x4xf32>
    %72 = vector.extract_strided_slice %21 {offsets = [0, 2, 1, 0], sizes = [1, 8, 16, 4], strides = [1, 1, 1, 1]} : vector<1x10x18x4xbf16> to vector<1x8x16x4xbf16>
    %73 = vector.shape_cast %72 : vector<1x8x16x4xbf16> to vector<8x16x4xbf16>
    %74 = vector.shape_cast %73 : vector<8x16x4xbf16> to vector<128x4xbf16>
    %75 = vector.extract_strided_slice %0 {offsets = [2, 1, 0, 0], sizes = [1, 1, 4, 4], strides = [1, 1, 1, 1]} : vector<3x3x4x4xbf16> to vector<1x1x4x4xbf16>
    %76 = vector.shape_cast %75 : vector<1x1x4x4xbf16> to vector<4x4xbf16>
    %cst_23 = arith.constant dense<0.000000e+00> : vector<128x4xf32>
    %77 = tpu.matmul %74, %76, %cst_23 {dimension_numbers = #tpu.dot_dimension_numbers<[1], [0], [0], [1], [0, 0, 1, 1], [], []>} : vector<128x4xbf16>, vector<4x4xbf16>, vector<128x4xf32> -> vector<128x4xf32>
    %78 = arith.addf %71, %77 : vector<128x4xf32>
    %79 = vector.extract_strided_slice %21 {offsets = [0, 2, 2, 0], sizes = [1, 8, 16, 4], strides = [1, 1, 1, 1]} : vector<1x10x18x4xbf16> to vector<1x8x16x4xbf16>
    %80 = vector.shape_cast %79 : vector<1x8x16x4xbf16> to vector<8x16x4xbf16>
    %81 = vector.shape_cast %80 : vector<8x16x4xbf16> to vector<128x4xbf16>
    %82 = vector.extract_strided_slice %0 {offsets = [2, 2, 0, 0], sizes = [1, 1, 4, 4], strides = [1, 1, 1, 1]} : vector<3x3x4x4xbf16> to vector<1x1x4x4xbf16>
    %83 = vector.shape_cast %82 : vector<1x1x4x4xbf16> to vector<4x4xbf16>
    %cst_24 = arith.constant dense<0.000000e+00> : vector<128x4xf32>
    %84 = tpu.matmul %81, %83, %cst_24 {dimension_numbers = #tpu.dot_dimension_numbers<[1], [0], [0], [1], [0, 0, 1, 1], [], []>} : vector<128x4xbf16>, vector<4x4xbf16>, vector<128x4xf32> -> vector<128x4xf32>
    %85 = arith.addf %78, %84 : vector<128x4xf32>
    %86 = vector.shape_cast %85 : vector<128x4xf32> to vector<1x8x16x4xf32>
    %c0_25 = arith.constant 0 : index
    %c0_26 = arith.constant 0 : index
    %87 = vector.load %arg7[%c0_25, %c0_26] : memref<1x4xf32, #tpu.memory_space<vmem>>, vector<1x4xf32>
    %88 = vector.shape_cast %87 : vector<1x4xf32> to vector<4xf32>
    %89 = vector.shape_cast %88 : vector<4xf32> to vector<1x1x1x4xf32>
    %90 = vector.broadcast %89 : vector<1x1x1x4xf32> to vector<1x8x16x4xf32>
    %91 = arith.mulf %86, %90 : vector<1x8x16x4xf32>
    %c0_27 = arith.constant 0 : index
    %c0_28 = arith.constant 0 : index
    %92 = vector.load %arg8[%c0_27, %c0_28] : memref<1x4xf32, #tpu.memory_space<vmem>>, vector<1x4xf32>
    %93 = vector.shape_cast %92 : vector<1x4xf32> to vector<4xf32>
    %94 = vector.shape_cast %93 : vector<4xf32> to vector<1x1x1x4xf32>
    %95 = vector.broadcast %94 : vector<1x1x1x4xf32> to vector<1x8x16x4xf32>
    %96 = arith.addf %91, %95 : vector<1x8x16x4xf32>
    %c0_29 = arith.constant 0 : index
    %c0_30 = arith.constant 0 : index
    %c0_31 = arith.constant 0 : index
    %c0_32 = arith.constant 0 : index
    %97 = vector.load %arg6[%c0_29, %c0_30, %c0_31, %c0_32] : memref<1x8x16x4xf32, #tpu.memory_space<vmem>>, vector<1x8x16x4xf32>
    %98 = arith.addf %96, %97 : vector<1x8x16x4xf32>
    %cst_33 = arith.constant 0.000000e+00 : f32
    %99 = vector.broadcast %cst_33 : f32 to vector<1x8x16x4xf32>
    %100 = arith.maximumf %98, %99 : vector<1x8x16x4xf32>
    %c0_34 = arith.constant 0 : index
    %c0_35 = arith.constant 0 : index
    %c0_36 = arith.constant 0 : index
    %c0_37 = arith.constant 0 : index
    %101 = vector.load %arg9[%c0_34, %c0_35, %c0_36, %c0_37] : memref<1x8x16x4xf32, #tpu.memory_space<vmem>>, vector<1x8x16x4xf32>
    tpu.vector_store %arg9[%c0_34, %c0_35, %c0_36, %c0_37], %100 {strides = array<i32>} : memref<1x8x16x4xf32, #tpu.memory_space<vmem>>, vector<1x8x16x4xf32>,
    return
  }
  func.func @transform_0(%arg0: i32, %arg1: i32) -> (i32, i32, i32, i32) {
    %c0_i32 = arith.constant 0 : i32
    %c0_i32_0 = arith.constant 0 : i32
    %c0_i32_1 = arith.constant 0 : i32
    return %arg0, %arg1, %c0_i32, %c0_i32_0 : i32, i32, i32, i32
  }
  func.func @transform_1(%arg0: i32, %arg1: i32) -> (i32, i32, i32, i32) {
    %c8_i32 = arith.constant 8 : i32
    %0 = arith.muli %arg1, %c8_i32 : i32
    %c1_i32 = arith.constant 1 : i32
    %1 = arith.subi %0, %c1_i32 : i32
    %c0_i32 = arith.constant 0 : i32
    %2 = arith.maxsi %1, %c0_i32 : i32
    %c0_i32_0 = arith.constant 0 : i32
    %c0_i32_1 = arith.constant 0 : i32
    %c0_i32_2 = arith.constant 0 : i32
    return %arg0, %2, %c0_i32_0, %c0_i32_1 : i32, i32, i32, i32
  }
  func.func @transform_2(%arg0: i32, %arg1: i32) -> (i32, i32, i32, i32) {
    %c8_i32 = arith.constant 8 : i32
    %0 = arith.muli %arg1, %c8_i32 : i32
    %c8_i32_0 = arith.constant 8 : i32
    %1 = arith.addi %0, %c8_i32_0 : i32
    %c15_i32 = arith.constant 15 : i32
    %2 = arith.minsi %1, %c15_i32 : i32
    %c0_i32 = arith.constant 0 : i32
    %c0_i32_1 = arith.constant 0 : i32
    %c0_i32_2 = arith.constant 0 : i32
    return %arg0, %2, %c0_i32, %c0_i32_1 : i32, i32, i32, i32
  }
  func.func @transform_3(%arg0: i32, %arg1: i32) -> (i32, i32, i32, i32) {
    %c0_i32 = arith.constant 0 : i32
    %c0_i32_0 = arith.constant 0 : i32
    %c0_i32_1 = arith.constant 0 : i32
    %c0_i32_2 = arith.constant 0 : i32
    %c0_i32_3 = arith.constant 0 : i32
    return %c0_i32, %c0_i32_0, %c0_i32_1, %c0_i32_2 : i32, i32, i32, i32
  }
  func.func @transform_4(%arg0: i32, %arg1: i32) -> (i32, i32, i32, i32) {
    %c0_i32 = arith.constant 0 : i32
    %c0_i32_0 = arith.constant 0 : i32
    %c0_i32_1 = arith.constant 0 : i32
    return %arg0, %arg1, %c0_i32, %c0_i32_0 : i32, i32, i32, i32
  }
  func.func @transform_5(%arg0: i32, %arg1: i32) -> (i32, i32) {
    %c0_i32 = arith.constant 0 : i32
    %c0_i32_0 = arith.constant 0 : i32
    %c0_i32_1 = arith.constant 0 : i32
    return %c0_i32, %c0_i32_0 : i32, i32
  }
  func.func @transform_6(%arg0: i32, %arg1: i32) -> (i32, i32) {
    %c0_i32 = arith.constant 0 : i32
    %c0_i32_0 = arith.constant 0 : i32
    %c0_i32_1 = arith.constant 0 : i32
    return %c0_i32, %c0_i32_0 : i32, i32
  }
  func.func @transform_7(%arg0: i32, %arg1: i32) -> (i32, i32, i32, i32) {
    %c0_i32 = arith.constant 0 : i32
    %c0_i32_0 = arith.constant 0 : i32
    %c0_i32_1 = arith.constant 0 : i32
    return %arg0, %arg1, %c0_i32, %c0_i32_0 : i32, i32, i32, i32
  }
}

</mosaic_0001>

<bundles_post_ra>
// kernel: localnet_residual_block_nhwc.2
= control target key start
LH: loop header
LB: loop body
LE: loop exit
PB: predicated region body
PF: predicated region fallthrough
CT: control target
= control target key end

     0   :  { %s2656_s15 = smov 0   ;;  %s2658_s16 = smov 0   ;;  %s3266_s0 = inlined_call_operand.vmem [shape: f32[2,16,16,4], index: 0, kind: input, shape index: {}, may-alias: {0,1,2}]   ;;  %s3267_s1 = inlined_call_operand.vmem [shape: f32[2,16,16,4], index: 1, kind: input, shape index: {}, may-alias: {0,1,2}]   ;;  %s3268_s2 = inlined_call_operand.vmem [shape: f32[2,16,16,4], index: 2, kind: input, shape index: {}, may-alias: {0,1,2}]   ;;  %s3269_s3 = inlined_call_operand.vmem [shape: bf16[3,3,4,4], index: 3, kind: input, shape index: {}]   ;;  %s3270_s4 = inlined_call_operand.vmem [shape: f32[2,2,2,4], index: 4, kind: output, shape index: {}]  }
   0x1   :  { %s2660_s17 = smov 0   ;;  %s2662_s18 = smov 0  }
   0x2   :  { %s2664_s19 = smov 0  }
   0x3 LB: > { %s23_s20 = sadd.s32 1, %s2621_s17  ;;  %s26_s21 = sadd.s32 1, %s2625_s18  ;;  %s2629_s19 = sphi %s2664_s19, %s14_s19   ;;  %s2625_s18 = sphi %s2662_s18, %s3277_s18   ;;  %s2621_s17 = sphi %s2660_s17, %s3276_s17   ;;  %s2617_s16 = sphi %s2658_s16, %s3275_s16   ;;  %s2613_s15 = sphi %s2656_s15, %s3274_s15  }
   0x4   : > { %p24_p0 = scmp.ge.s32.totalorder %s23_s20, 2  ;;  %p2068_p1 = scmp.ge.s32.totalorder %s2629_s19, 1 }
   0x5   : > { %p248_p2 = scmp.lt.s32.totalorder %s2629_s19, 5 }
   0x6   : > { %s3279_s20 = smov (%p24_p0, %s23_s20), 0  ;;  %s3281_s21 = smov (!%p24_p0, %s26_s21), %s2625_s18 }
   0x7   : > { %p249_p3 = pnand %p2068_p1, %p248_p2  ;;  %p28_p4 = scmp.ge.s32.totalorder %s3281_s21, 2 }
   0x8   : > { %v2691_v0 = vld [vmem:[%s3269_s3 + $0x8] sm:$0x3] (!%p249_p3)  ;;  %vm672_vm0 = vcmask (!%p249_p3), 1041408   ;;  %s2694_s24 = sshll.u32 (!%p249_p3), %s2613_s15, 3  ;;  %p309_p5 = scmp.lt.s32.totalorder (!%p249_p3), %s2617_s16, 1  ;;  %vm527_vm1 = vcmask (!%p249_p3), 1040384  }
   0x9   : > { %s3283_s21 = smov (%p28_p4, %s3281_s21), 0  ;;  %252 = sbr.rel (%p249_p3) target bundleno = 481 (0x1e1), region = 36 }
   0xa   : > { %2545 = vmatprep.subr.msk.bf16.mxu0 (!%p249_p3), %vm672_vm0, %v2691_v0  ;;  %v2700_v1 = vsel (!%p249_p3), %vm672_vm0, %v2691_v0, 0  ;;  %p311_p6 = scmp.lt.s32.totalorder (!%p249_p3), %s2694_s24, 15  ;;  %v363_v2 = vld [vmem:[%s3269_s3 + $0x2] sm:$0x3] (!%p249_p3)  ;;  %v2712_v3 = vld [vmem:[%s3269_s3] sm:$0x3] (!%p249_p3) }
   0xb   : > { %2322 = vmatpush3.bf16.msra.mxu0 (!%p249_p3), %v2700_v1  ;;  %2541 = vmatprep.subr.msk.bf16.mxu1 (!%p249_p3), %vm672_vm0, %v363_v2  ;;  %v674_v4 = vsel (!%p249_p3), %vm672_vm0, %v363_v2, 0  ;;  %v2720_v5 = vld [vmem:[%s3269_s3 + $0xa] sm:$0x3] (!%p249_p3)  ;;  %s2074_s7 = sadd.s32 (!%p249_p3), 4294967295, %s2694_s24  ;;  %p374_p9 = scmp.gt.s32.totalorder (!%p249_p3), %s2613_s15, 0  ;;  %vm647_vm5 = vcmask (!%p249_p3), 31744  }
   0xc   : > { %2250 = vmatpush3.bf16.msra.mxu1 (!%p249_p3), %v674_v4  ;;  %2547 = vmatprep.subr.msk.bf16.mxu0 (!%p249_p3), %vm672_vm0, %v2720_v5  ;;  %p321_p7 = scmp.gt.s32.totalorder (!%p249_p3), %s2074_s7, 0  ;;  %p2075_p8 = scmp.lt.s32.totalorder (!%p249_p3), %s2074_s7, 15  ;;  %vm528_vm2 = vsmask.f32 (!%p249_p3), 256  ;;  %vm550_vm3 = vsmask.f32 (!%p249_p3), 7424 }
   0xd   : > { %2542 = vmatprep.subr.msk.bf16.mxu1 (!%p249_p3), %vm672_vm0, %v2712_v3  ;;  %s337_s14 = sadd.s32 (!%p249_p3), 8, %s2694_s24  ;;  %vm2759_vm4 = vmand (!%p249_p3), %vm527_vm1, %vm528_vm2  ;;  %v1328_v42 = vsel (!%p249_p3), %vm672_vm0, %v2720_v5, 0  ;;  %p355_p12 = scmp.lt.s32.totalorder (!%p249_p3), %s2613_s15, 1  ;;  %vm905_vm6 = vcmask (!%p249_p3), 1046528   ;;  %vm1925_vm7 = vcmask (!%p249_p3), 25600  }
   0xe   : > { %p2751_p10 = scmp.lt.s32.totalorder (!%p249_p3), %s337_s14, 15 }
  0x10   : > { %s3285_s16 = smov (!%p309_p5, %s2617_s16), 1  ;;  %s3291_s14 = smov (!%p2751_p10, %s337_s14), 15 }
  0x11   : > { %s312_s29 = scalar_select %p311_p6, %s2694_s24, 15 }
  0x12   : > { %s2723_s6 = sshll.u32 %s3285_s16, 5  ;;  %s3293_s14 = smov (!%p2751_p10, %s3291_s14), 15 }
  0x13   : > { %s2070_s8 = sshll.u32 %s312_s29, 1  ;;  %s2853_s27 = sshll.u32 %s3293_s14, 1 }
  0x14   : > { %s315_s9 = sadd.s32 %s2723_s6, %s2070_s8 }
  0x15   : > { %s2072_s10 = sshll.u32 %s315_s9, 3 }
  0x16   : > { %s2735_s13 = scalar_lea.vmem %s3266_s0, %s2072_s10 }
  0x17   : > { %v413_v6 = vld [vmem:[%s2735_s13] sm:$0xff]  ;;  %v414_v7 = vld [vmem:[%s2735_s13 + $0x8] sm:$0xff]  ;;  %v415_v8 = vld [vmem:[%s2735_s13 + $0x10] sm:$0xff]  ;;  %s322_s22 = scalar_select %p321_p7, %s2074_s7, 0 }
  0x18   : > { %v429_v9 = vpack.c.bf16 %v414_v7, %v413_v6  ;;  %v416_v10 = vld [vmem:[%s2735_s13 + $0x18] sm:$0xff]  ;;  %s375_s23 = scalar_select %p374_p9, 1, 0  ;;  %v417_v11 = vld [vmem:[%s2735_s13 + $0x20] sm:$0xff]  ;;  %v418_v12 = vld [vmem:[%s2735_s13 + $0x28] sm:$0xff] }
  0x19   : > { %v430_v13 = vpack.c.bf16 %v416_v10, %v415_v8  ;;  %s3287_s22 = smov (!%p2075_p8, %s322_s22), 15  ;;  %v431_v14 = vpack.c.bf16 %v418_v12, %v417_v11  ;;  %v419_v15 = vld [vmem:[%s2735_s13 + $0x30] sm:$0xff]  ;;  %v420_v16 = vld [vmem:[%s2735_s13 + $0x38] sm:$0xff]  ;;  %v421_v28 = vld [vmem:[%s2735_s13 + $0x40] sm:$0xff] }
  0x1a   : > { %v445_v17 = vshrl.u32 %v429_v9, 16  ;;  %v448_v18 = vshll.u32 %v429_v9, 16  ;;  %s2747_s25 = scvt.s32.f32 %s375_s23  ;;  %v432_v19 = vpack.c.bf16 %v420_v16, %v419_v15  ;;  %s2080_s26 = sshll.u32 %s3287_s22, 1  ;;  %v422_v29 = vld [vmem:[%s2735_s13 + $0x48] sm:$0xff] }
  0x1b   : > { %v452_v20 = vshrl.u32 %v430_v13, 16  ;;  %v455_v21 = vshll.u32 %v430_v13, 16  ;;  %v459_v22 = vshrl.u32 %v431_v14, 16  ;;  %s329_s28 = sadd.s32 %s2080_s26, %s2723_s6  ;;  %v462_v27 = vshll.u32 %v431_v14, 16  ;;  %v2843_v14 = vld [vmem:[%s3269_s3 + $0xc] sm:$0x3] }
  0x1c   : > { %v447_v23 = vrot.slane %v445_v17, 7  ;;  %p378_p11 = scmp.ne.f32.partialorder %s2747_s25, %s2747_s25  ;;  %v466_v24 = vshrl.u32 %v432_v19, 16  ;;  %s2082_s29 = sshll.u32 %s329_s28, 3  ;;  %v469_v33 = vshll.u32 %v432_v19, 16  ;;  %v2786_v43 = vpack.c.bf16 %v422_v29, %v421_v28  ;;  %v423_v17 = vld [vmem:[%s2735_s13 + $0x50] sm:$0xff]  ;;  %v426_v28 = vld [vmem:[%s2735_s13 + $0x68] sm:$0xff] }
  0x1d   : > { %v454_v26 = vrot.slane %v452_v20, 7  ;;  %s379_s30 = sshrl.u32 %s2747_s25, 16  ;;  %s331_s8 = scalar_lea.vmem %s3267_s1, %s2082_s29  ;;  %v461_v32 = vrot.slane %v459_v22, 7 }
  0x1e   : > { %v450_v30 = vor.u32 %v448_v18, %v447_v23  ;;  %v2768_v31 = vsel %vm2759_vm4, %v447_v23, 0  ;;  %s380_s9 = sand.u32 1, %s379_s30  ;;  %v371_v37 = vld [vmem:[%s331_s8] sm:$0xff]  ;;  %v372_v38 = vld [vmem:[%s331_s8 + $0x8] sm:$0xff]  ;;  %v468_v39 = vrot.slane %v466_v24, 7  ;;  %v473_v15 = vshrl.u32 %v2786_v43, 16  ;;  %s346_s29 = sadd.s32 %s2853_s27, %s2723_s6 }
  0x1f   : > { %v571_v34 = vshll.u32 %v2768_v31, 16  ;;  %v457_v35 = vor.u32 %v455_v21, %v454_v26  ;;  %v2776_v36 = vsel %vm2759_vm4, %v454_v26, 0  ;;  %s381_s10 = sadd.s32 32767, %s380_s9  ;;  %v373_v47 = vpack.c.bf16 %v372_v38, %v371_v37  ;;  %v424_v18 = vld [vmem:[%s2735_s13 + $0x58] sm:$0xff] }
  0x20   : > { %v2780_v40 = vsel %vm2759_vm4, 0, %v450_v30  ;;  %v583_v41 = vshll.u32 %v2776_v36, 16  ;;  %s382_s11 = sadd.s32 %s381_s10, %s2747_s25  ;;  %v464_v51 = vor.u32 %v462_v27, %v461_v32  ;;  %v2801_v53 = vsel %vm2759_vm4, %v461_v32, 0  ;;  %s2090_s25 = sshll.u32 %s3285_s16, 1  ;;  %v425_v27 = vld [vmem:[%s2735_s13 + $0x60] sm:$0xff] }
  0x21   : > { %v564_v44 = vshrl.u32 %v2780_v40, 16  ;;  %v566_v45 = vshll.u32 %v2780_v40, 16  ;;  %v2792_v46 = vsel %vm2759_vm4, 0, %v457_v35  ;;  %s383_s12 = sand.u32 4294901760, %s382_s11  ;;  %v573_v48 = vrot.slane %v571_v34, 1 }
  0x22   : > { %v576_v49 = vshrl.u32 %v2792_v46, 16  ;;  %v578_v50 = vshll.u32 %v2792_v46, 16  ;;  %s3289_s12 = smov (%p378_p11, %s383_s12), 2143289344  ;;  %v471_v54 = vor.u32 %v469_v33, %v468_v39  ;;  %v2805_v55 = vsel %vm2759_vm4, %v468_v39, 0 }
  0x23   : > { %v568_v52 = vrot.slane %v566_v45, 1  ;;  %v585_v57 = vrot.slane %v583_v41, 1  ;;  %s386_s22 = sshrl.u32 %s3289_s12, 16  ;;  %v2815_v58 = vsel %vm2759_vm4, 0, %v464_v51  ;;  %v595_v59 = vshll.u32 %v2801_v53, 16 }
  0x24   : > { %v580_v56 = vrot.slane %v578_v50, 1  ;;  %s387_s23 = sshll.u32 %s386_s22, 16  ;;  %v588_v61 = vshrl.u32 %v2815_v58, 16  ;;  %v590_v62 = vshll.u32 %v2815_v58, 16  ;;  %v2822_v63 = vsel %vm2759_vm4, 0, %v471_v54 }
  0x25   : > { %v569_v60 = vor.u32 %v568_v52, %v564_v44  ;;  %s388_s24 = sor.u32 %s387_s23, %s386_s22  ;;  %v600_v4 = vshrl.u32 %v2822_v63, 16  ;;  %v602_v5 = vshll.u32 %v2822_v63, 16  ;;  %v607_v6 = vshll.u32 %v2805_v55, 16 }
  0x26   : > { %v581_v2 = vor.u32 %v580_v56, %v576_v49  ;;  %v389_v8 = vstv %s388_s24  ;;  %v592_v9 = vrot.slane %v590_v62, 1  ;;  %v597_v10 = vrot.slane %v595_v59, 1  ;;  %s356_s28 = scalar_select %p355_p12, %s2613_s15, 1 }
  0x27   : > { %v2830_v7 = vsel %vm550_vm3, %v569_v60, %v573_v48  ;;  %v391_v12 = vmul.bf16 %v389_v8, %v373_v47  ;;  %v604_v13 = vrot.slane %v602_v5, 1  ;;  %v609_v22 = vrot.slane %v607_v6, 1  ;;  %s396_s14 = scalar_select %p355_p12, 1, 0  ;;  %v427_v60 = vld [vmem:[%s2735_s13 + $0x70] sm:$0xff] }
  0x28   : > { %2323 = vmatprep.mubr.msk.bf16.mxu0 %vm647_vm5, %v2830_v7  ;;  %v2838_v11 = vsel %vm550_vm3, %v581_v2, %v585_v57  ;;  %v593_v16 = vor.u32 %v592_v9, %v588_v61  ;;  %s2857_s30 = sadd.s32 %s2090_s25, %s356_s28  ;;  %v910_v23 = vrot.slane %v2768_v31, 1  ;;  %v909_v26 = vrot.slane %v2780_v40, 1  ;;  %s2089_s15 = sshll.u32 %s346_s29, 3  ;;  %v428_v61 = vld [vmem:[%s2735_s13 + $0x78] sm:$0xff] }
  0x29   : > { %2324 = vmatmul.mubr.msk.bf16.vlgmr.msra.gmra.mrb[0].mxu0 %vm647_vm5, %v2838_v11  ;;  %v438_v19 = vshrl.u32 %v391_v12, 16  ;;  %v441_v20 = vshll.u32 %v391_v12, 16  ;;  %v605_v21 = vor.u32 %v604_v13, %v600_v4  ;;  %v475_v30 = vrot.slane %v473_v15, 7  ;;  %s2890_s5 = scvt.s32.f32 %s396_s14  ;;  %s348_s12 = scalar_lea.vmem %s3268_s2, %s2089_s15  ;;  %v2945_v15 = vld [vmem:[%s3269_s3 + $0x4] sm:$0x3] }
  0x2a   : > { %2340 = vmatpush3.bf16.msra.mxu0 %v1328_v42  ;;  %v2861_v24 = vsel %vm550_vm3, %v593_v16, %v597_v10  ;;  %v476_v32 = vshll.u32 %v2786_v43, 16  ;;  %v434_v31 = vpack.c.bf16 %v424_v18, %v423_v17  ;;  %v2878_v37 = vpack.c.bf16 %v426_v28, %v425_v27  ;;  %v2950_v16 = vld [vmem:[%s3269_s3 + $0xe] sm:$0x3]  ;;  %s2091_s15 = sshll.u32 %s2857_s30, 1 }
  0x2b   : > { %2548 = vmatprep.subr.msk.bf16.mxu0 %vm672_vm0, %v2843_v14  ;;  %v440_v29 = vrot.slane %v438_v19, 7  ;;  %2327 = vmatprep.mubr.msk.bf16.mxu0 %vm647_vm5, %v2861_v24  ;;  %v2876_v35 = vsel %vm550_vm3, %v605_v21, %v609_v22  ;;  %v2884_v39 = vsel %vm905_vm6, %v909_v26, %v910_v23  ;;  %v913_v48 = vrot.slane %v2776_v36, 1  ;;  %s400_s7 = sshrl.u32 %s2890_s5, 16  ;;  %p399_p13 = scmp.ne.f32.partialorder %s2890_s5, %s2890_s5  ;;  %v392_v19 = vld [vmem:[%s348_s12] sm:$0xff] }
  0x2c   : > { %v478_v42 = vor.u32 %v476_v32, %v475_v30  ;;  %v480_v43 = vshrl.u32 %v434_v31, 16  ;;  %v483_v47 = vshll.u32 %v434_v31, 16  ;;  %v912_v49 = vrot.slane %v2792_v46, 1  ;;  %s401_s8 = sand.u32 1, %s400_s7 }
  0x2d   : > { %v443_v33 = vor.u32 %v441_v20, %v440_v29  ;;  %v2873_v34 = vsel %vm2759_vm4, %v440_v29, 0  ;;  %v487_v51 = vshrl.u32 %v2878_v37, 16  ;;  %v915_v56 = vrot.slane %v2815_v58, 1  ;;  %s402_s6 = sadd.s32 32767, %s401_s8  ;;  %v393_v20 = vld [vmem:[%s348_s12 + $0x8] sm:$0xff] }
  0x2e   : > { %v559_v38 = vshll.u32 %v2873_v34, 16  ;;  %v482_v50 = vrot.slane %v480_v43, 7  ;;  %v2909_v36 = vsel %vm2759_vm4, 0, %v478_v42  ;;  %v916_v57 = vrot.slane %v2801_v53, 1  ;;  %s403_s9 = sadd.s32 %s402_s6, %s2890_s5  ;;  %s360_s6 = scalar_lea.vmem %s3270_s4, %s2091_s15 }
  0x2f   : > { %v2888_v41 = vsel %vm2759_vm4, 0, %v443_v33  ;;  %v790_v2 = vsel %vm672_vm0, %v2712_v3, 0  ;;  %v2919_v4 = vsel %vm905_vm6, %v912_v49, %v913_v48  ;;  %v545_v5 = vsel %vm2759_vm4, %v475_v30, 0  ;;  %s404_s13 = sand.u32 4294901760, %s403_s9 }
  0x30   : > { %v552_v44 = vshrl.u32 %v2888_v41, 16  ;;  %v554_v45 = vshll.u32 %v2888_v41, 16  ;;  %v561_v54 = vrot.slane %v559_v38, 1  ;;  %v485_v59 = vor.u32 %v483_v47, %v482_v50  ;;  %s3295_s13 = smov (%p399_p13, %s404_s13), 2143289344 }
  0x31   : > { %2328 = vmatmul.mubr.msk.bf16.gmra.mrb[4].mxu0 %vm647_vm5, %v2876_v35  ;;  %v489_v6 = vrot.slane %v487_v51, 7  ;;  %v490_v53 = vshll.u32 %v2878_v37, 16  ;;  %v614_v9 = vshll.u32 %v2909_v36, 16  ;;  %v436_v10 = vpack.c.bf16 %v428_v61, %v427_v60  ;;  %s407_s26 = sshrl.u32 %s3295_s13, 16 }
  0x32   : > { %2341 = vmatprep.mubr.msk.bf16.mxu0 %vm647_vm5, %v2884_v39  ;;  %v556_v52 = vrot.slane %v554_v45, 1  ;;  %v2931_v3 = vsel %vm2759_vm4, 0, %v485_v59  ;;  %v2938_v12 = vsel %vm905_vm6, %v915_v56, %v916_v57  ;;  %v1447_v13 = vsel %vm672_vm0, %v2843_v14, 0  ;;  %s408_s16 = sshll.u32 %s407_s26, 16 }
  0x33   : > { %v619_v17 = vshll.u32 %v545_v5, 16  ;;  %v918_v18 = vrot.slane %v2822_v63, 1  ;;  %v919_v14 = vrot.slane %v2805_v55, 1  ;;  %v612_v21 = vshrl.u32 %v2909_v36, 16  ;;  %s409_s28 = sor.u32 %s408_s16, %s407_s26 }
  0x34   : > { %v557_v62 = vor.u32 %v556_v52, %v552_v44  ;;  %v626_v22 = vshll.u32 %v2931_v3, 16  ;;  %v492_v23 = vor.u32 %v490_v53, %v489_v6  ;;  %v616_v26 = vrot.slane %v614_v9, 1 }
  0x35   : > { %v921_v55 = vrot.slane %v2909_v36, 1  ;;  %v922_v27 = vrot.slane %v545_v5, 1  ;;  %v494_v28 = vshrl.u32 %v436_v10, 16  ;;  %v394_v29 = vpack.c.bf16 %v393_v20, %v392_v19 }
  0x36   : > { %v562_v8 = vsel %vm550_vm3, %v557_v62, %v561_v54  ;;  %v410_v30 = vstv %s409_s28  ;;  %v621_v32 = vrot.slane %v619_v17, 1  ;;  %v2972_v31 = vsel %vm905_vm6, %v918_v18, %v919_v14 }
  0x37   : > { %2251 = vmatprep.mubr.msk.bf16.mxu1 %vm647_vm5, %v562_v8  ;;  %v624_v37 = vshrl.u32 %v2931_v3, 16  ;;  %v628_v38 = vrot.slane %v626_v22, 1  ;;  %v2977_v42 = vsel %vm2759_vm4, 0, %v492_v23  ;;  %v412_v43 = vmul.bf16 %v410_v30, %v394_v29 }
  0x38   : > { %2252 = vmatmul.mubr.msk.bf16.vlgmr.msra.gmra.mrb[0].mxu1 %vm647_vm5, %v2830_v7  ;;  %v546_v7 = vsel %vm2759_vm4, %v482_v50, 0  ;;  %v617_v44 = vor.u32 %v616_v26, %v612_v21  ;;  %v2980_v45 = vsel %vm905_vm6, %v921_v55, %v922_v27  ;;  %v496_v47 = vrot.slane %v494_v28, 7 }
  0x39   : > { %2342 = vmatmul.mubr.msk.bf16.vlgmr.msra.gmra.mrb[0].mxu0 %vm647_vm5, %v2919_v4  ;;  %2268 = vmatpush3.bf16.msra.mxu1 %v790_v2  ;;  %v631_v33 = vshll.u32 %v546_v7, 16  ;;  %v497_v48 = vshll.u32 %v436_v10, 16  ;;  %v925_v49 = vrot.slane %v546_v7, 1  ;;  %v501_v50 = vshrl.u32 %v412_v43, 16 }
  0x3a   : > { %2255 = vmatprep.mubr.msk.bf16.mxu1 %vm647_vm5, %v2838_v11  ;;  %2345 = vmatprep.mubr.msk.bf16.mxu0 %vm647_vm5, %v2938_v12  ;;  %v504_v51 = vshll.u32 %v412_v43, 16  ;;  %v547_v54 = vsel %vm2759_vm4, %v489_v6, 0  ;;  %v638_v56 = vshll.u32 %v2977_v42, 16  ;;  %v924_v57 = vrot.slane %v2931_v3, 1 }
  0x3b   : > { %2358 = vmatpush3.bf16.msra.mxu0 %v1447_v13  ;;  %2543 = vmatprep.subr.msk.bf16.mxu1 %vm672_vm0, %v2945_v15  ;;  %v633_v52 = vrot.slane %v631_v33, 1  ;;  %v629_v59 = vor.u32 %v628_v38, %v624_v37  ;;  %v927_v60 = vrot.slane %v2977_v42, 1  ;;  %v928_v61 = vrot.slane %v547_v54, 1 }
  0x3c   : > { %2549 = vmatprep.subr.msk.bf16.mxu0 %vm672_vm0, %v2950_v16  ;;  %v503_v62 = vrot.slane %v501_v50, 7  ;;  %v2996_v2 = vsel %vm550_vm3, %v617_v44, %v621_v32  ;;  %v499_v5 = vor.u32 %v497_v48, %v496_v47  ;;  %v636_v6 = vshrl.u32 %v2977_v42, 16  ;;  %v365_v48 = vld [vmem:[%s3269_s3 + $0x6] sm:$0x3] }
  0x3d   : > { %v643_v53 = vshll.u32 %v547_v54, 16  ;;  %v640_v10 = vrot.slane %v638_v56, 1  ;;  %v3002_v13 = vsel %vm905_vm6, %v924_v57, %v925_v49  ;;  %v3005_v14 = vsel %vm550_vm3, %v629_v59, %v633_v52  ;;  %v370_v49 = vld [vmem:[%s3269_s3 + $0x10] sm:$0x3] }
  0x3e   : > { %v506_v8 = vor.u32 %v504_v51, %v503_v62  ;;  %v549_v9 = vsel %vm2759_vm4, %v503_v62, 0  ;;  %v3008_v19 = vsel %vm905_vm6, %v927_v60, %v928_v61  ;;  %v3012_v20 = vsel %vm2759_vm4, %v496_v47, 0 }
  0x3f   : > { %v1569_v17 = vshll.u32 %v549_v9, 16  ;;  %v1695_v18 = vrot.slane %v549_v9, 1  ;;  %v3018_v7 = vsel %vm2759_vm4, 0, %v499_v5  ;;  %v641_v25 = vor.u32 %v640_v10, %v636_v6 }
  0x40   : > { %2256 = vmatmul.mubr.msk.bf16.gmra.mrb[4].mxu1 %vm647_vm5, %v2861_v24  ;;  %v539_v21 = vsel %vm2759_vm4, 0, %v506_v8  ;;  %v645_v29 = vrot.slane %v643_v53, 1  ;;  %v1321_v30 = vrot.slane %v3018_v7, 1  ;;  %v1322_v32 = vrot.slane %v3012_v20, 1 }
  0x41   : > { %2346 = vmatmul.mubr.msk.bf16.gmra.mrb[4].mxu0 %vm647_vm5, %v2972_v31  ;;  %2259 = vmatprep.mubr.msk.bf16.mxu1 %vm647_vm5, %v2876_v35  ;;  %v1562_v22 = vshrl.u32 %v539_v21, 16  ;;  %v1564_v23 = vshll.u32 %v539_v21, 16  ;;  %v1694_v26 = vrot.slane %v539_v21, 1  ;;  %v1571_v27 = vrot.slane %v1569_v17, 1 }
  0x42   : > { %2349 = vmatprep.mubr.msk.bf16.mxu0 %vm647_vm5, %v2980_v45  ;;  %v3035_v38 = vsel %vm550_vm3, %v641_v25, %v645_v29  ;;  %v3038_v43 = vsel %vm905_vm6, %v1321_v30, %v1322_v32  ;;  %v955_v44 = vsel %vm672_vm0, %v2945_v15, 0  ;;  %v1577_v47 = vsel %vm672_vm0, %v2950_v16, 0 }
  0x43   : > { %v1566_v55 = vrot.slane %v1564_v23, 1  ;;  %v3025_v28 = vsel %vm905_vm6, %v1694_v26, %v1695_v18  ;;  %v907_v15 = vrot.slane %v2873_v34, 1  ;;  %v906_v16 = vrot.slane %v2888_v41, 1 }
  0x44   : > { %v1074_v51 = vsel %vm672_vm0, %v365_v48, 0  ;;  %v1701_v52 = vsel %vm672_vm0, %v370_v49, 0  ;;  %v1189_v34 = vshrl.u32 %v3018_v7, 16 }
  0x45   : > { %v1567_v33 = vor.u32 %v1566_v55, %v1562_v22  ;;  %v908_v50 = vsel %vm905_vm6, %v906_v16, %v907_v15 }
  0x47   : > { %v1572_v37 = vsel %vm550_vm3, %v1567_v33, %v1571_v27 }
  0x48   : > { %2260 = vmatmul.mubr.msk.bf16.gmra.mrb[8].mxu1 %vm647_vm5, %v2996_v2 }
  0x49   : > { %2350 = vmatmul.mubr.msk.bf16.gmra.mrb[8].mxu0 %vm647_vm5, %v3002_v13  ;;  %2263 = vmatprep.mubr.msk.bf16.mxu1 %vm647_vm5, %v3005_v14 }
  0x4a   : > { %2353 = vmatprep.mubr.msk.bf16.mxu0 %vm647_vm5, %v3008_v19 }
  0x50   : > { %2264 = vmatmul.mubr.msk.bf16.gmra.mrb[12].mxu1 %vm647_vm5, %v3035_v38 }
  0x51   : > { %2354 = vmatmul.mubr.msk.bf16.gmra.mrb[12].mxu0 %vm647_vm5, %v3038_v43  ;;  %2269 = vmatprep.mubr.msk.bf16.mxu1 %vm647_vm5, %v2888_v41 }
  0x52   : > { %2359 = vmatprep.mubr.msk.bf16.mxu0 %vm647_vm5, %v2792_v46 }
  0x58   : > { %2270 = vmatmul.mubr.msk.bf16.vlgmr.msra.gmra.mrb[0].mxu1 %vm647_vm5, %v2780_v40 }
  0x59   : > { %2360 = vmatmul.mubr.msk.bf16.vlgmr.msra.gmra.mrb[0].mxu0 %vm647_vm5, %v2815_v58  ;;  %2286 = vmatpush3.bf16.msra.mxu1 %v955_v44 }
  0x5a   : > { %2273 = vmatprep.mubr.msk.bf16.mxu1 %vm647_vm5, %v2792_v46  ;;  %2363 = vmatprep.mubr.msk.bf16.mxu0 %vm647_vm5, %v2822_v63 }
  0x5b   : > { %2376 = vmatpush3.bf16.msra.mxu0 %v1577_v47  ;;  %2544 = vmatprep.subr.msk.bf16.mxu1 %vm672_vm0, %v365_v48 }
  0x5c   : > { %2550 = vmatprep.subr.msk.bf16.mxu0 %vm672_vm0, %v370_v49 }
  0x60   : > { %2274 = vmatmul.mubr.msk.bf16.gmra.mrb[4].mxu1 %vm647_vm5, %v2815_v58 }
  0x61   : > { %2364 = vmatmul.mubr.msk.bf16.gmra.mrb[4].mxu0 %vm647_vm5, %v2909_v36  ;;  %2277 = vmatprep.mubr.msk.bf16.mxu1 %vm647_vm5, %v2822_v63 }
  0x62   : > { %2367 = vmatprep.mubr.msk.bf16.mxu0 %vm647_vm5, %v2931_v3 }
  0x68   : > { %2278 = vmatmul.mubr.msk.bf16.gmra.mrb[8].mxu1 %vm647_vm5, %v2909_v36 }
  0x69   : > { %2368 = vmatmul.mubr.msk.bf16.gmra.mrb[8].mxu0 %vm647_vm5, %v2977_v42  ;;  %2281 = vmatprep.mubr.msk.bf16.mxu1 %vm647_vm5, %v2931_v3 }
  0x6a   : > { %2371 = vmatprep.mubr.msk.bf16.mxu0 %vm647_vm5, %v3018_v7 }
  0x70   : > { %2282 = vmatmul.mubr.msk.bf16.gmra.mrb[12].mxu1 %vm647_vm5, %v2977_v42 }
  0x71   : > { %2372 = vmatmul.mubr.msk.bf16.gmra.mrb[12].mxu0 %vm647_vm5, %v539_v21  ;;  %2287 = vmatprep.mubr.msk.bf16.mxu1 %vm647_vm5, %v908_v50 }
  0x72   : > { %2377 = vmatprep.mubr.msk.bf16.mxu0 %vm647_vm5, %v2838_v11  ;;  %v1191_v11 = vshll.u32 %v3018_v7, 16 }
  0x74   : > { %v1193_v41 = vrot.slane %v1191_v11, 1 }
  0x78   : > { %2288 = vmatmul.mubr.msk.bf16.vlgmr.msra.gmra.mrb[0].mxu1 %vm647_vm5, %v2884_v39  ;;  %v1196_v39 = vshll.u32 %v3012_v20, 16 }
  0x79   : > { %2378 = vmatmul.mubr.msk.bf16.vlgmr.msra.gmra.mrb[0].mxu0 %vm647_vm5, %v2861_v24  ;;  %2304 = vmatpush3.bf16.msra.mxu1 %v1074_v51  ;;  %v1194_v24 = vor.u32 %v1193_v41, %v1189_v34 }
  0x7a   : > { %2291 = vmatprep.mubr.msk.bf16.mxu1 %vm647_vm5, %v2919_v4  ;;  %2381 = vmatprep.mubr.msk.bf16.mxu0 %vm647_vm5, %v2876_v35  ;;  %v1198_v35 = vrot.slane %v1196_v39, 1 }
  0x7b   : > { %2394 = vmatpush3.bf16.msra.mxu0 %v1701_v52  ;;  %2546 = vmatprep.subr.msk.bf16.mxu1 %vm672_vm0, %v2691_v0 }
  0x7c   : > { %v1199_v0 = vsel %vm550_vm3, %v1194_v24, %v1198_v35 }
  0x80   : > { %2292 = vmatmul.mubr.msk.bf16.gmra.mrb[4].mxu1 %vm647_vm5, %v2938_v12 }
  0x81   : > { %2382 = vmatmul.mubr.msk.bf16.gmra.mrb[4].mxu0 %vm647_vm5, %v2996_v2  ;;  %2295 = vmatprep.mubr.msk.bf16.mxu1 %vm647_vm5, %v2972_v31 }
  0x82   : > { %2385 = vmatprep.mubr.msk.bf16.mxu0 %vm647_vm5, %v3005_v14 }
  0x88   : > { %2296 = vmatmul.mubr.msk.bf16.gmra.mrb[8].mxu1 %vm647_vm5, %v2980_v45 }
  0x89   : > { %2386 = vmatmul.mubr.msk.bf16.gmra.mrb[8].mxu0 %vm647_vm5, %v3035_v38  ;;  %2299 = vmatprep.mubr.msk.bf16.mxu1 %vm647_vm5, %v3002_v13 }
  0x8a   : > { %2389 = vmatprep.mubr.msk.bf16.mxu0 %vm647_vm5, %v1199_v0 }
  0x90   : > { %2300 = vmatmul.mubr.msk.bf16.gmra.mrb[12].mxu1 %vm647_vm5, %v3008_v19 }
  0x91   : > { %2390 = vmatmul.mubr.msk.bf16.gmra.mrb[12].mxu0 %vm647_vm5, %v1572_v37  ;;  %2305 = vmatprep.mubr.msk.bf16.mxu1 %vm647_vm5, %v2780_v40 }
  0x92   : > { %2395 = vmatprep.mubr.msk.bf16.mxu0 %vm647_vm5, %v2919_v4 }
  0x98   : > { %2306 = vmatmul.mubr.msk.bf16.vlgmr.msra.gmra.mrb[0].mxu1 %vm647_vm5, %v2792_v46 }
  0x99   : > { %2396 = vmatmul.mubr.msk.bf16.vlgmr.msra.gmra.mrb[0].mxu0 %vm647_vm5, %v2938_v12  ;;  %2412 = vmatpush3.bf16.msra.mxu1 %v2700_v1 }
  0x9a   : > { %2309 = vmatprep.mubr.msk.bf16.mxu1 %vm647_vm5, %v2815_v58  ;;  %2399 = vmatprep.mubr.msk.bf16.mxu0 %vm647_vm5, %v2972_v31 }
  0xa0   : > { %2310 = vmatmul.mubr.msk.bf16.gmra.mrb[4].mxu1 %vm647_vm5, %v2822_v63 }
  0xa1   : > { %2400 = vmatmul.mubr.msk.bf16.gmra.mrb[4].mxu0 %vm647_vm5, %v2980_v45  ;;  %2313 = vmatprep.mubr.msk.bf16.mxu1 %vm647_vm5, %v2909_v36 }
  0xa2   : > { %2403 = vmatprep.mubr.msk.bf16.mxu0 %vm647_vm5, %v3002_v13 }
  0xa8   : > { %2314 = vmatmul.mubr.msk.bf16.gmra.mrb[8].mxu1 %vm647_vm5, %v2931_v3 }
  0xa9   : > { %2404 = vmatmul.mubr.msk.bf16.gmra.mrb[8].mxu0 %vm647_vm5, %v3008_v19  ;;  %2317 = vmatprep.mubr.msk.bf16.mxu1 %vm647_vm5, %v2977_v42 }
  0xaa   : > { %2407 = vmatprep.mubr.msk.bf16.mxu0 %vm647_vm5, %v3038_v43 }
  0xb0   : > { %2318 = vmatmul.mubr.msk.bf16.gmra.mrb[12].mxu1 %vm647_vm5, %v3018_v7 }
  0xb1   : > { %2408 = vmatmul.mubr.msk.bf16.gmra.mrb[12].mxu0 %vm647_vm5, %v3025_v28  ;;  %2331 = vmatprep.mubr.msk.bf16.mxu1 %vm647_vm5, %v2996_v2 }
  0xb8   : > { %2332 = vmatmul.mubr.msk.bf16.vlgmr.msra.gmra.mrb[8].mxu1 %vm647_vm5, %v3005_v14 }
  0xb9   : > { %2335 = vmatprep.mubr.msk.bf16.mxu1 %vm647_vm5, %v3035_v38 }
  0xc0   : > { %2336 = vmatmul.mubr.msk.bf16.gmra.mrb[12].mxu1 %vm647_vm5, %v1199_v0 }
 0x16b   : > { %v2307_v1 = vpop.f32.mrb[0].mxu1 }
 0x16c   : > { %v2397_v40 = vpop.f32.mrb[0].mxu0  ;;  %v1110_v46 = vpop.f32.mrb[1].mxu1 }
 0x16d   : > { %v3167_v58 = vadd.f32 %v2397_v40, %v2307_v1  ;;  %v1737_v63 = vpop.f32.mrb[1].mxu0  ;;  %v2308_v36 = vpop.f32.mrb[2].mxu1 }
 0x16e   : > { %v3169_v4 = vadd.f32 %v1737_v63, %v1110_v46  ;;  %v2398_v3 = vpop.f32.mrb[2].mxu0  ;;  %v1113_v12 = vpop.f32.mrb[3].mxu1 }
 0x16f   : > { %v3171_v31 = vadd.f32 %v2398_v3, %v2308_v36  ;;  %v1740_v42 = vpop.f32.mrb[3].mxu0  ;;  %v1819_v60 = vsel %vm647_vm5, %v3167_v58, 0.0 }
 0x170   : > { %v3173_v45 = vadd.f32 %v1740_v42, %v1113_v12  ;;  %v1816_v54 = vsel %vm647_vm5, %v3169_v4, 0.0 }
 0x171   : > { %v1821_v8 = vsel %vm647_vm5, %v3171_v31, 0.0 }
 0x172   : > { %v1817_v56 = vsel %vm647_vm5, %v3173_v45, 0.0 }
 0x173   : > { %v1818_v57 = vadd.f32 %v1817_v56, %v1816_v54  ;;  %v2311_v59 = vpop.f32.mrb[4].mxu1 }
 0x174   : > { %v2401_v61 = vpop.f32.mrb[4].mxu0  ;;  %v1126_v62 = vpop.f32.mrb[5].mxu1 }
 0x175   : > { %v1820_v2 = vadd.f32 %v1819_v60, %v1818_v57  ;;  %v3181_v5 = vadd.f32 %v2401_v61, %v2311_v59  ;;  %v1753_v6 = vpop.f32.mrb[5].mxu0  ;;  %v2312_v53 = vpop.f32.mrb[6].mxu1 }
 0x176   : > { %v3185_v9 = vadd.f32 %v1753_v6, %v1126_v62  ;;  %v2402_v10 = vpop.f32.mrb[6].mxu0  ;;  %v1129_v13 = vpop.f32.mrb[7].mxu1 }
 0x177   : > { %v1822_v17 = vadd.f32 %v1821_v8, %v1820_v2  ;;  %v3187_v18 = vadd.f32 %v2402_v10, %v2312_v53  ;;  %v1756_v14 = vpop.f32.mrb[7].mxu0  ;;  %v1827_v23 = vsel %vm647_vm5, %v3181_v5, 0.0 }
 0x178   : > { %v1823_v19 = vsel %vm647_vm5, %v3185_v9, 0.0  ;;  %v2420_v20 = vadd.f32 %v1756_v14, %v1129_v13 }
 0x179   : > { %v1824_v21 = vadd.f32 %v1823_v19, %v1822_v17  ;;  %v1829_v28 = vsel %vm647_vm5, %v3187_v18, 0.0 }
 0x17a   : > { %v1825_v7 = vsel %vm647_vm5, %v2420_v20, 0.0 }
 0x17b   : > { %v1826_v22 = vadd.f32 %v1825_v7, %v1824_v21 }
 0x17c   : > { %v2405_v26 = vpop.f32.mrb[8].mxu0 }
 0x17d   : > { %v1828_v55 = vadd.f32 %v1827_v23, %v1826_v22  ;;  %v1769_v27 = vpop.f32.mrb[9].mxu0 }
 0x17e   : > { %v2406_v25 = vpop.f32.mrb[10].mxu0 }
 0x17f   : > { %v1772_v29 = vpop.f32.mrb[11].mxu0  ;;  %v1830_v30 = vadd.f32 %v1829_v28, %v1828_v55 }
 0x184   : > { %v2409_v32 = vpop.f32.mrb[12].mxu0 }
 0x185   : > { %v1785_v33 = vpop.f32.mrb[13].mxu0 }
 0x186   : > { %v2410_v37 = vpop.f32.mrb[14].mxu0 }
 0x187   : > { %v1788_v38 = vpop.f32.mrb[15].mxu0 }
 0x18b   : > { %v2333_v43 = vpop.f32.mrb[8].mxu1 }
 0x18c   : > { %v2421_v44 = vadd.f32 %v2405_v26, %v2333_v43  ;;  %v1272_v47 = vpop.f32.mrb[9].mxu1 }
 0x18d   : > { %v2422_v48 = vadd.f32 %v1769_v27, %v1272_v47  ;;  %v2334_v49 = vpop.f32.mrb[10].mxu1 }
 0x18e   : > { %v2423_v15 = vadd.f32 %v2406_v25, %v2334_v49  ;;  %v1275_v16 = vpop.f32.mrb[11].mxu1  ;;  %v1835_v41 = vsel %vm647_vm5, %v2421_v44, 0.0 }
 0x18f   : > { %v1831_v50 = vsel %vm647_vm5, %v2422_v48, 0.0  ;;  %v2424_v51 = vadd.f32 %v1772_v29, %v1275_v16 }
 0x190   : > { %v1832_v52 = vadd.f32 %v1831_v50, %v1830_v30  ;;  %v1837_v1 = vsel %vm647_vm5, %v2423_v15, 0.0 }
 0x191   : > { %v1833_v11 = vsel %vm647_vm5, %v2424_v51, 0.0 }
 0x192   : > { %v1834_v34 = vadd.f32 %v1833_v11, %v1832_v52 }
 0x193   : > { %v2337_v39 = vpop.f32.mrb[12].mxu1 }
 0x194   : > { %v1836_v24 = vadd.f32 %v1835_v41, %v1834_v34  ;;  %v2425_v35 = vadd.f32 %v2409_v32, %v2337_v39  ;;  %v1288_v0 = vpop.f32.mrb[13].mxu1 }
 0x195   : > { %v2426_v40 = vadd.f32 %v1785_v33, %v1288_v0  ;;  %v2338_v46 = vpop.f32.mrb[14].mxu1 }
 0x196   : > { %v1838_v63 = vadd.f32 %v1837_v1, %v1836_v24  ;;  %v2427_v36 = vadd.f32 %v2410_v37, %v2338_v46  ;;  %v1291_v3 = vpop.f32.mrb[15].mxu1  ;;  %v1843_v59 = vsel %vm647_vm5, %v2425_v35, 0.0 }
 0x197   : > { %v1839_v12 = vsel %vm647_vm5, %v2426_v40, 0.0  ;;  %v2428_v42 = vadd.f32 %v1788_v38, %v1291_v3 }
 0x198   : > { %v1840_v54 = vadd.f32 %v1839_v12, %v1838_v63  ;;  %v1845_v61 = vsel %vm647_vm5, %v2427_v36, 0.0 }
 0x199   : > { %v1841_v56 = vsel %vm647_vm5, %v2428_v42, 0.0 }
 0x19a   : > { %v1842_v57 = vadd.f32 %v1841_v56, %v1840_v54 }
 0x19c   : > { %v1844_v60 = vadd.f32 %v1843_v59, %v1842_v57 }
 0x19e   : > { %v1846_v62 = vadd.f32 %v1845_v61, %v1844_v60 }
 0x1a0   : > { %v1847_v2 = vrot.slane %v1846_v62, 4 }
 0x1a2   : > { %v1848_v6 = vadd.f32 %v1847_v2, %v1846_v62 }
 0x1a4   : > { %v1849_v53 = vrot.slane %v1848_v6, 2 }
 0x1a6   : > { %v1850_v8 = vadd.f32 %v1849_v53, %v1848_v6 }
 0x1a8   : > { %v1851_v10 = vrot.slane %v1850_v8, 1 }
 0x1aa   : > { %v1852_v13 = vadd.f32 %v1851_v10, %v1850_v8 }
 0x1ac   : > { %v3204_v17 = vmul.f32 0.0078125, %v1852_v13 }
 0x1ae   : > { %v1854_v14 = vsub.f32 %v3169_v4, %v3204_v17  ;;  %v1855_v19 = vsub.f32 %v3173_v45, %v3204_v17  ;;  %v1856_v21 = vsub.f32 %v3167_v58, %v3204_v17  ;;  %v1857_v7 = vsub.f32 %v3171_v31, %v3204_v17 }
 0x1af   : > { %v1858_v22 = vsub.f32 %v3185_v9, %v3204_v17  ;;  %v1859_v23 = vsub.f32 %v2420_v20, %v3204_v17  ;;  %v1860_v26 = vsub.f32 %v3181_v5, %v3204_v17  ;;  %v1861_v4 = vsub.f32 %v3187_v18, %v3204_v17 }
 0x1b0   : > { %v1862_v55 = vsub.f32 %v2422_v48, %v3204_v17  ;;  %v1863_v45 = vsub.f32 %v2424_v51, %v3204_v17  ;;  %v1864_v58 = vsub.f32 %v2421_v44, %v3204_v17  ;;  %v1865_v27 = vsub.f32 %v2423_v15, %v3204_v17 }
 0x1b1   : > { %v1866_v31 = vsub.f32 %v2426_v40, %v3204_v17  ;;  %v1867_v9 = vsub.f32 %v2428_v42, %v3204_v17  ;;  %v1868_v20 = vsub.f32 %v2425_v35, %v3204_v17  ;;  %v1869_v28 = vsub.f32 %v2427_v36, %v3204_v17 }
 0x1b2   : > { %v1870_v5 = vmul.f32 %v1854_v14, %v1854_v14  ;;  %v1871_v25 = vmul.f32 %v1855_v19, %v1855_v19  ;;  %v1872_v29 = vmul.f32 %v1856_v21, %v1856_v21  ;;  %v1873_v18 = vmul.f32 %v1857_v7, %v1857_v7 }
 0x1b3   : > { %v1874_v37 = vmul.f32 %v1858_v22, %v1858_v22  ;;  %v1875_v44 = vmul.f32 %v1859_v23, %v1859_v23  ;;  %v1876_v49 = vmul.f32 %v1860_v26, %v1860_v26  ;;  %v1877_v50 = vmul.f32 %v1861_v4, %v1861_v4 }
 0x1b4   : > { %v1886_v30 = vsel %vm647_vm5, %v1870_v5, 0.0  ;;  %v1887_v32 = vsel %vm647_vm5, %v1871_v25, 0.0  ;;  %v1889_v38 = vsel %vm647_vm5, %v1872_v29, 0.0  ;;  %v1891_v47 = vsel %vm647_vm5, %v1873_v18, 0.0 }
 0x1b5   : > { %v1888_v33 = vadd.f32 %v1887_v32, %v1886_v30  ;;  %v1893_v15 = vsel %vm647_vm5, %v1874_v37, 0.0  ;;  %v1895_v51 = vsel %vm647_vm5, %v1875_v44, 0.0  ;;  %v1878_v11 = vmul.f32 %v1862_v55, %v1862_v55 }
 0x1b6   : > { %v1897_v34 = vsel %vm647_vm5, %v1876_v49, 0.0  ;;  %v1879_v39 = vmul.f32 %v1863_v45, %v1863_v45  ;;  %v1899_v24 = vsel %vm647_vm5, %v1877_v50, 0.0  ;;  %v1880_v0 = vmul.f32 %v1864_v58, %v1864_v58 }
 0x1b7   : > { %v1890_v43 = vadd.f32 %v1889_v38, %v1888_v33  ;;  %v1901_v1 = vsel %vm647_vm5, %v1878_v11, 0.0  ;;  %v1881_v46 = vmul.f32 %v1865_v27, %v1865_v27  ;;  %v1882_v3 = vmul.f32 %v1866_v31, %v1866_v31 }
 0x1b8   : > { %v1903_v63 = vsel %vm647_vm5, %v1879_v39, 0.0  ;;  %v1905_v12 = vsel %vm647_vm5, %v1880_v0, 0.0  ;;  %v1883_v54 = vmul.f32 %v1867_v9, %v1867_v9  ;;  %v1884_v59 = vmul.f32 %v1868_v20, %v1868_v20 }
 0x1b9   : > { %v1892_v48 = vadd.f32 %v1891_v47, %v1890_v43  ;;  %v1907_v56 = vsel %vm647_vm5, %v1881_v46, 0.0  ;;  %v1909_v60 = vsel %vm647_vm5, %v1882_v3, 0.0  ;;  %v1885_v62 = vmul.f32 %v1869_v28, %v1869_v28 }
 0x1ba   : > { %v1911_v2 = vsel %vm647_vm5, %v1883_v54, 0.0  ;;  %v1913_v53 = vsel %vm647_vm5, %v1884_v59, 0.0 }
 0x1bb   : > { %v1894_v16 = vadd.f32 %v1893_v15, %v1892_v48  ;;  %v1915_v10 = vsel %vm647_vm5, %v1885_v62, 0.0 }
 0x1bd   : > { %v1896_v52 = vadd.f32 %v1895_v51, %v1894_v16 }
 0x1bf   : > { %v1898_v41 = vadd.f32 %v1897_v34, %v1896_v52 }
 0x1c1   : > { %v1900_v35 = vadd.f32 %v1899_v24, %v1898_v41 }
 0x1c3   : > { %v1902_v40 = vadd.f32 %v1901_v1, %v1900_v35 }
 0x1c5   : > { %v1904_v36 = vadd.f32 %v1903_v63, %v1902_v40 }
 0x1c7   : > { %v1906_v42 = vadd.f32 %v1905_v12, %v1904_v36 }
 0x1c9   : > { %v1908_v57 = vadd.f32 %v1907_v56, %v1906_v42 }
 0x1cb   : > { %v1910_v61 = vadd.f32 %v1909_v60, %v1908_v57 }
 0x1cd   : > { %v1912_v6 = vadd.f32 %v1911_v2, %v1910_v61 }
 0x1cf   : > { %v1914_v8 = vadd.f32 %v1913_v53, %v1912_v6 }
 0x1d1   : > { %v1916_v13 = vadd.f32 %v1915_v10, %v1914_v8 }
 0x1d3   : > { %v1917_v14 = vrot.slane %v1916_v13, 4 }
 0x1d5   : > { %v1918_v19 = vadd.f32 %v1917_v14, %v1916_v13 }
 0x1d7   : > { %v1919_v21 = vrot.slane %v1918_v19, 2 }
 0x1d9   : > { %v1920_v7 = vadd.f32 %v1919_v21, %v1918_v19 }
 0x1db   : > { %v1921_v22 = vrot.slane %v1920_v7, 1 }
 0x1dd   : > { %v1922_v23 = vadd.f32 %v1921_v22, %v1920_v7 }
 0x1df   : > { %v1924_v26 = vsel %vm527_vm1, %v3204_v17, %v1922_v23 }
 0x1e0   : > { %1926 = vst.msk [vmem:[%s360_s6] sm:$0x3] %vm1925_vm7, %v1924_v26 }
 0x1e1 PF: > { %s14_s19 = sadd.s32 1, %s2629_s19   ;;  %s3274_s15 = smov %s2621_s17 }
 0x1e2   : > { %p11_p0 = scmp.ge.s32.totalorder %s14_s19, 6   ;;  %s3275_s16 = smov %s2625_s18 }
 0x1e3   : > { %s3276_s17 = smov %s3279_s20  ;;  %s3277_s18 = smov %s3283_s21 }
 0x1e4   :  { %13 = sbr.rel (!%p11_p0) target bundleno = 3 (0x3), region = 72 }

// kernel: localnet_residual_block_nhwc.3
= control target key start
LH: loop header
LB: loop body
LE: loop exit
PB: predicated region body
PF: predicated region fallthrough
CT: control target
= control target key end

     0   :  { %s2834_s24 = smov 0   ;;  %s2836_s25 = smov 0   ;;  %s3459_s0 = inlined_call_operand.vmem [shape: f32[2,16,16,4], index: 0, kind: input, shape index: {}, may-alias: {0,1,2}]   ;;  %s3460_s1 = inlined_call_operand.vmem [shape: f32[2,16,16,4], index: 1, kind: input, shape index: {}, may-alias: {0,1,2}]   ;;  %s3461_s2 = inlined_call_operand.vmem [shape: f32[2,16,16,4], index: 2, kind: input, shape index: {}, may-alias: {0,1,2}]   ;;  %s3462_s3 = inlined_call_operand.vmem [shape: bf16[3,3,4,4], index: 3, kind: input, shape index: {}]   ;;  %s3463_s4 = inlined_call_operand.vmem [shape: f32[2,16,16,4], index: 4, kind: input, shape index: {}]   ;;  %s3464_s5 = inlined_call_operand.vmem [shape: f32[1,4], index: 5, kind: input, shape index: {}]   ;;  %s3465_s6 = inlined_call_operand.vmem [shape: f32[1,4], index: 6, kind: input, shape index: {}]   ;;  %s3466_s7 = inlined_call_operand.vmem [shape: f32[2,16,16,4], index: 7, kind: output, shape index: {}]  }
   0x1   :  { %s2838_s26 = smov 0   ;;  %s2840_s27 = smov 0  }
   0x2   :  { %s2842_s28 = smov 0  }
   0x3 LB: > { %s26_s29 = sadd.s32 1, %s2784_s26  ;;  %s29_s30 = sadd.s32 1, %s2788_s27  ;;  %s2792_s28 = sphi %s2842_s28, %s17_s28   ;;  %s2788_s27 = sphi %s2840_s27, %s3473_s27   ;;  %s2784_s26 = sphi %s2838_s26, %s3472_s26   ;;  %s2780_s25 = sphi %s2836_s25, %s3471_s25   ;;  %s2776_s24 = sphi %s2834_s24, %s3470_s24  }
   0x4   : > { %p27_p0 = scmp.ge.s32.totalorder %s26_s29, 2  ;;  %p2223_p1 = scmp.ge.s32.totalorder %s2792_s28, 1 }
   0x5   : > { %p341_p2 = scmp.lt.s32.totalorder %s2792_s28, 5 }
   0x6   : > { %s3475_s29 = smov (%p27_p0, %s26_s29), 0  ;;  %s3477_s30 = smov (!%p27_p0, %s29_s30), %s2788_s27 }
   0x7   : > { %p342_p3 = pnand %p2223_p1, %p341_p2  ;;  %p31_p4 = scmp.ge.s32.totalorder %s3477_s30, 2 }
   0x8   : > { %v2869_v0 = vld [vmem:[%s3462_s3 + $0x8] sm:$0x3] (!%p342_p3)  ;;  %vm797_vm0 = vcmask (!%p342_p3), 1041408   ;;  %s2872_s10 = sshll.u32 (!%p342_p3), %s2776_s24, 3  ;;  %p420_p5 = scmp.lt.s32.totalorder (!%p342_p3), %s2780_s25, 1  ;;  %vm652_vm1 = vcmask (!%p342_p3), 1040384  }
   0x9   : > { %s3479_s30 = smov (%p31_p4, %s3477_s30), 0  ;;  %345 = sbr.rel (%p342_p3) target bundleno = 418 (0x1a2), region = 48 }
   0xa   : > { %2708 = vmatprep.subr.msk.bf16.mxu0 (!%p342_p3), %vm797_vm0, %v2869_v0  ;;  %v2878_v1 = vsel (!%p342_p3), %vm797_vm0, %v2869_v0, 0  ;;  %p422_p6 = scmp.lt.s32.totalorder (!%p342_p3), %s2872_s10, 15  ;;  %v488_v2 = vld [vmem:[%s3462_s3 + $0x2] sm:$0x3] (!%p342_p3)  ;;  %v2888_v3 = vld [vmem:[%s3462_s3] sm:$0x3] (!%p342_p3) }
   0xb   : > { %2485 = vmatpush3.bf16.msra.mxu0 (!%p342_p3), %v2878_v1  ;;  %2704 = vmatprep.subr.msk.bf16.mxu1 (!%p342_p3), %vm797_vm0, %v488_v2  ;;  %v799_v4 = vsel (!%p342_p3), %vm797_vm0, %v488_v2, 0  ;;  %v2896_v5 = vld [vmem:[%s3462_s3 + $0xa] sm:$0x3] (!%p342_p3)  ;;  %s2229_s19 = sadd.s32 (!%p342_p3), 4294967295, %s2872_s10  ;;  %p499_p9 = scmp.gt.s32.totalorder (!%p342_p3), %s2776_s24, 0  ;;  %vm772_vm5 = vcmask (!%p342_p3), 31744  }
   0xc   : > { %2413 = vmatpush3.bf16.msra.mxu1 (!%p342_p3), %v799_v4  ;;  %2710 = vmatprep.subr.msk.bf16.mxu0 (!%p342_p3), %vm797_vm0, %v2896_v5  ;;  %p432_p7 = scmp.gt.s32.totalorder (!%p342_p3), %s2229_s19, 0  ;;  %p2230_p8 = scmp.lt.s32.totalorder (!%p342_p3), %s2229_s19, 15  ;;  %vm653_vm2 = vsmask.f32 (!%p342_p3), 256  ;;  %vm675_vm3 = vsmask.f32 (!%p342_p3), 7424 }
   0xd   : > { %2705 = vmatprep.subr.msk.bf16.mxu1 (!%p342_p3), %vm797_vm0, %v2888_v3  ;;  %s448_s9 = sadd.s32 (!%p342_p3), 8, %s2872_s10  ;;  %vm2937_vm4 = vmand (!%p342_p3), %vm652_vm1, %vm653_vm2  ;;  %v1453_v42 = vsel (!%p342_p3), %vm797_vm0, %v2896_v5, 0  ;;  %p520_p12 = scmp.lt.s32.totalorder (!%p342_p3), %s2776_s24, 1  ;;  %vm1030_vm6 = vcmask (!%p342_p3), 1046528  }
   0xe   : > { %p2929_p10 = scmp.lt.s32.totalorder (!%p342_p3), %s448_s9, 15 }
  0x10   : > { %s3481_s25 = smov (!%p420_p5, %s2780_s25), 1  ;;  %s3487_s9 = smov (!%p2929_p10, %s448_s9), 15 }
  0x11   : > { %s423_s15 = scalar_select %p422_p6, %s2872_s10, 15 }
  0x12   : > { %s2898_s18 = sshll.u32 %s3481_s25, 5  ;;  %s3489_s9 = smov (!%p2929_p10, %s3487_s9), 15 }
  0x13   : > { %s2225_s20 = sshll.u32 %s423_s15, 1  ;;  %s3029_s15 = sshll.u32 %s3489_s9, 1 }
  0x14   : > { %s426_s21 = sadd.s32 %s2898_s18, %s2225_s20 }
  0x15   : > { %s2906_s22 = sshll.u32 %s426_s21, 3  ;;  %s457_s21 = sadd.s32 %s3029_s15, %s2898_s18 }
  0x16   : > { %s2913_s8 = scalar_lea.vmem %s3459_s0, %s2906_s22 }
  0x17   : > { %v538_v6 = vld [vmem:[%s2913_s8] sm:$0xff]  ;;  %v539_v7 = vld [vmem:[%s2913_s8 + $0x8] sm:$0xff]  ;;  %v540_v8 = vld [vmem:[%s2913_s8 + $0x10] sm:$0xff]  ;;  %s433_s11 = scalar_select %p432_p7, %s2229_s19, 0 }
  0x18   : > { %v554_v9 = vpack.c.bf16 %v539_v7, %v538_v6  ;;  %v541_v10 = vld [vmem:[%s2913_s8 + $0x18] sm:$0xff]  ;;  %s500_s12 = scalar_select %p499_p9, 1, 0  ;;  %v542_v11 = vld [vmem:[%s2913_s8 + $0x20] sm:$0xff]  ;;  %v543_v12 = vld [vmem:[%s2913_s8 + $0x28] sm:$0xff] }
  0x19   : > { %v555_v13 = vpack.c.bf16 %v541_v10, %v540_v8  ;;  %s3483_s11 = smov (!%p2230_p8, %s433_s11), 15  ;;  %v556_v14 = vpack.c.bf16 %v543_v12, %v542_v11  ;;  %v544_v15 = vld [vmem:[%s2913_s8 + $0x30] sm:$0xff]  ;;  %v545_v16 = vld [vmem:[%s2913_s8 + $0x38] sm:$0xff]  ;;  %v546_v28 = vld [vmem:[%s2913_s8 + $0x40] sm:$0xff] }
  0x1a   : > { %v570_v17 = vshrl.u32 %v554_v9, 16  ;;  %v573_v18 = vshll.u32 %v554_v9, 16  ;;  %s2925_s13 = scvt.s32.f32 %s500_s12  ;;  %v557_v19 = vpack.c.bf16 %v545_v16, %v544_v15  ;;  %s2235_s14 = sshll.u32 %s3483_s11, 1  ;;  %v547_v29 = vld [vmem:[%s2913_s8 + $0x48] sm:$0xff] }
  0x1b   : > { %v577_v20 = vshrl.u32 %v555_v13, 16  ;;  %v580_v21 = vshll.u32 %v555_v13, 16  ;;  %v584_v22 = vshrl.u32 %v556_v14, 16  ;;  %s440_s16 = sadd.s32 %s2235_s14, %s2898_s18  ;;  %v587_v27 = vshll.u32 %v556_v14, 16  ;;  %v3020_v14 = vld [vmem:[%s3462_s3 + $0xc] sm:$0x3] }
  0x1c   : > { %v572_v23 = vrot.slane %v570_v17, 7  ;;  %p503_p11 = scmp.ne.f32.partialorder %s2925_s13, %s2925_s13  ;;  %v591_v24 = vshrl.u32 %v557_v19, 16  ;;  %s2237_s17 = sshll.u32 %s440_s16, 3  ;;  %v594_v33 = vshll.u32 %v557_v19, 16  ;;  %v2964_v43 = vpack.c.bf16 %v547_v29, %v546_v28  ;;  %v548_v17 = vld [vmem:[%s2913_s8 + $0x50] sm:$0xff]  ;;  %v551_v28 = vld [vmem:[%s2913_s8 + $0x68] sm:$0xff] }
  0x1d   : > { %v579_v26 = vrot.slane %v577_v20, 7  ;;  %s504_s19 = sshrl.u32 %s2925_s13, 16  ;;  %s442_s23 = scalar_lea.vmem %s3460_s1, %s2237_s17  ;;  %v586_v32 = vrot.slane %v584_v22, 7 }
  0x1e   : > { %v575_v30 = vor.u32 %v573_v18, %v572_v23  ;;  %v2946_v31 = vsel %vm2937_vm4, %v572_v23, 0  ;;  %s505_s25 = sand.u32 1, %s504_s19  ;;  %v496_v37 = vld [vmem:[%s442_s23] sm:$0xff]  ;;  %v497_v38 = vld [vmem:[%s442_s23 + $0x8] sm:$0xff]  ;;  %v593_v39 = vrot.slane %v591_v24, 7  ;;  %v598_v15 = vshrl.u32 %v2964_v43, 16  ;;  %s3373_s19 = scalar_lea.vmem %s3466_s7, %s2906_s22 }
  0x1f   : > { %v696_v34 = vshll.u32 %v2946_v31, 16  ;;  %v582_v35 = vor.u32 %v580_v21, %v579_v26  ;;  %v2954_v36 = vsel %vm2937_vm4, %v579_v26, 0  ;;  %s506_s11 = sadd.s32 32767, %s505_s25  ;;  %v498_v47 = vpack.c.bf16 %v497_v38, %v496_v37  ;;  %v549_v18 = vld [vmem:[%s2913_s8 + $0x58] sm:$0xff] }
  0x20   : > { %v2958_v40 = vsel %vm2937_vm4, 0, %v575_v30  ;;  %v708_v41 = vshll.u32 %v2954_v36, 16  ;;  %s507_s12 = sadd.s32 %s506_s11, %s2925_s13  ;;  %v589_v51 = vor.u32 %v587_v27, %v586_v32  ;;  %v2979_v53 = vsel %vm2937_vm4, %v586_v32, 0  ;;  %v550_v27 = vld [vmem:[%s2913_s8 + $0x60] sm:$0xff] }
  0x21   : > { %v689_v44 = vshrl.u32 %v2958_v40, 16  ;;  %v691_v45 = vshll.u32 %v2958_v40, 16  ;;  %v2970_v46 = vsel %vm2937_vm4, 0, %v582_v35  ;;  %s508_s14 = sand.u32 4294901760, %s507_s12  ;;  %v698_v48 = vrot.slane %v696_v34, 1  ;;  %s2244_s12 = sshll.u32 %s457_s21, 3 }
  0x22   : > { %v701_v49 = vshrl.u32 %v2970_v46, 16  ;;  %v703_v50 = vshll.u32 %v2970_v46, 16  ;;  %s3485_s14 = smov (%p503_p11, %s508_s14), 2143289344  ;;  %v596_v54 = vor.u32 %v594_v33, %v593_v39  ;;  %v2983_v55 = vsel %vm2937_vm4, %v593_v39, 0 }
  0x23   : > { %v693_v52 = vrot.slane %v691_v45, 1  ;;  %v710_v57 = vrot.slane %v708_v41, 1  ;;  %s511_s16 = sshrl.u32 %s3485_s14, 16  ;;  %v2993_v58 = vsel %vm2937_vm4, 0, %v589_v51  ;;  %v720_v59 = vshll.u32 %v2979_v53, 16 }
  0x24   : > { %v705_v56 = vrot.slane %v703_v50, 1  ;;  %s512_s13 = sshll.u32 %s511_s16, 16  ;;  %v713_v61 = vshrl.u32 %v2993_v58, 16  ;;  %v715_v62 = vshll.u32 %v2993_v58, 16  ;;  %v3001_v63 = vsel %vm2937_vm4, 0, %v596_v54 }
  0x25   : > { %v694_v60 = vor.u32 %v693_v52, %v689_v44  ;;  %s513_s10 = sor.u32 %s512_s13, %s511_s16  ;;  %v725_v4 = vshrl.u32 %v3001_v63, 16  ;;  %v727_v5 = vshll.u32 %v3001_v63, 16  ;;  %v732_v6 = vshll.u32 %v2983_v55, 16  ;;  %s3351_s16 = scalar_lea.vmem %s3463_s4, %s2906_s22 }
  0x26   : > { %v706_v2 = vor.u32 %v705_v56, %v701_v49  ;;  %v514_v8 = vstv %s513_s10  ;;  %v717_v9 = vrot.slane %v715_v62, 1  ;;  %v722_v10 = vrot.slane %v720_v59, 1  ;;  %s521_s20 = scalar_select %p520_p12, 1, 0 }
  0x27   : > { %v3007_v7 = vsel %vm675_vm3, %v694_v60, %v698_v48  ;;  %v516_v12 = vmul.bf16 %v514_v8, %v498_v47  ;;  %v729_v13 = vrot.slane %v727_v5, 1  ;;  %v734_v22 = vrot.slane %v732_v6, 1  ;;  %v552_v60 = vld [vmem:[%s2913_s8 + $0x70] sm:$0xff]  ;;  %s459_s10 = scalar_lea.vmem %s3461_s2, %s2244_s12 }
  0x28   : > { %2486 = vmatprep.mubr.msk.bf16.mxu0 %vm772_vm5, %v3007_v7  ;;  %v3015_v11 = vsel %vm675_vm3, %v706_v2, %v710_v57  ;;  %v718_v16 = vor.u32 %v717_v9, %v713_v61  ;;  %s3033_s23 = scvt.s32.f32 %s521_s20  ;;  %v1035_v23 = vrot.slane %v2946_v31, 1  ;;  %v1034_v26 = vrot.slane %v2958_v40, 1  ;;  %v553_v61 = vld [vmem:[%s2913_s8 + $0x78] sm:$0xff] }
  0x29   : > { %2487 = vmatmul.mubr.msk.bf16.vlgmr.msra.gmra.mrb[0].mxu0 %vm772_vm5, %v3015_v11  ;;  %v563_v19 = vshrl.u32 %v516_v12, 16  ;;  %v566_v20 = vshll.u32 %v516_v12, 16  ;;  %v730_v21 = vor.u32 %v729_v13, %v725_v4  ;;  %v600_v30 = vrot.slane %v598_v15, 7  ;;  %v3120_v15 = vld [vmem:[%s3462_s3 + $0x4] sm:$0x3] }
  0x2a   : > { %2503 = vmatpush3.bf16.msra.mxu0 %v1453_v42  ;;  %v3037_v24 = vsel %vm675_vm3, %v718_v16, %v722_v10  ;;  %v601_v31 = vshll.u32 %v2964_v43, 16  ;;  %v559_v32 = vpack.c.bf16 %v549_v18, %v548_v17  ;;  %v3054_v37 = vpack.c.bf16 %v551_v28, %v550_v27  ;;  %s525_s24 = sshrl.u32 %s3033_s23, 16  ;;  %p524_p13 = scmp.ne.f32.partialorder %s3033_s23, %s3033_s23  ;;  %v3125_v16 = vld [vmem:[%s3462_s3 + $0xe] sm:$0x3] }
  0x2b   : > { %2711 = vmatprep.subr.msk.bf16.mxu0 %vm797_vm0, %v3020_v14  ;;  %v565_v29 = vrot.slane %v563_v19, 7  ;;  %2490 = vmatprep.mubr.msk.bf16.mxu0 %vm772_vm5, %v3037_v24  ;;  %v3052_v35 = vsel %vm675_vm3, %v730_v21, %v734_v22  ;;  %v3059_v39 = vsel %vm1030_vm6, %v1034_v26, %v1035_v23  ;;  %s526_s9 = sand.u32 1, %s525_s24  ;;  %v1038_v48 = vrot.slane %v2954_v36, 1  ;;  %v517_v19 = vld [vmem:[%s459_s10] sm:$0xff] }
  0x2c   : > { %v603_v42 = vor.u32 %v601_v31, %v600_v30  ;;  %v605_v43 = vshrl.u32 %v559_v32, 16  ;;  %s527_s25 = sadd.s32 32767, %s526_s9  ;;  %v608_v47 = vshll.u32 %v559_v32, 16  ;;  %v1037_v49 = vrot.slane %v2970_v46, 1 }
  0x2d   : > { %v568_v33 = vor.u32 %v566_v20, %v565_v29  ;;  %v3049_v34 = vsel %vm2937_vm4, %v565_v29, 0  ;;  %s528_s11 = sadd.s32 %s527_s25, %s3033_s23  ;;  %v612_v51 = vshrl.u32 %v3054_v37, 16  ;;  %v1040_v56 = vrot.slane %v2993_v58, 1  ;;  %v518_v20 = vld [vmem:[%s459_s10 + $0x8] sm:$0xff] }
  0x2e   : > { %v684_v38 = vshll.u32 %v3049_v34, 16  ;;  %v607_v50 = vrot.slane %v605_v43, 7  ;;  %s529_s14 = sand.u32 4294901760, %s528_s11  ;;  %v3087_v36 = vsel %vm2937_vm4, 0, %v603_v42  ;;  %v1041_v57 = vrot.slane %v2979_v53, 1 }
  0x2f   : > { %v3065_v41 = vsel %vm2937_vm4, 0, %v568_v33  ;;  %s3491_s14 = smov (%p524_p13, %s529_s14), 2143289344  ;;  %v915_v2 = vsel %vm797_vm0, %v2888_v3, 0  ;;  %v3097_v4 = vsel %vm1030_vm6, %v1037_v49, %v1038_v48  ;;  %v670_v5 = vsel %vm2937_vm4, %v600_v30, 0 }
  0x30   : > { %v677_v44 = vshrl.u32 %v3065_v41, 16  ;;  %v679_v45 = vshll.u32 %v3065_v41, 16  ;;  %v686_v54 = vrot.slane %v684_v38, 1  ;;  %v610_v59 = vor.u32 %v608_v47, %v607_v50  ;;  %s532_s18 = sshrl.u32 %s3491_s14, 16 }
  0x31   : > { %2491 = vmatmul.mubr.msk.bf16.gmra.mrb[4].mxu0 %vm772_vm5, %v3052_v35  ;;  %v614_v6 = vrot.slane %v612_v51, 7  ;;  %v615_v8 = vshll.u32 %v3054_v37, 16  ;;  %s533_s17 = sshll.u32 %s532_s18, 16  ;;  %v739_v9 = vshll.u32 %v3087_v36, 16  ;;  %v561_v10 = vpack.c.bf16 %v553_v61, %v552_v60 }
  0x32   : > { %2504 = vmatprep.mubr.msk.bf16.mxu0 %vm772_vm5, %v3059_v39  ;;  %v681_v52 = vrot.slane %v679_v45, 1  ;;  %v3109_v3 = vsel %vm2937_vm4, 0, %v610_v59  ;;  %v3113_v12 = vsel %vm1030_vm6, %v1040_v56, %v1041_v57  ;;  %v1572_v13 = vsel %vm797_vm0, %v3020_v14, 0  ;;  %s534_s21 = sor.u32 %s533_s17, %s532_s18 }
  0x33   : > { %v744_v17 = vshll.u32 %v670_v5, 16  ;;  %v1043_v18 = vrot.slane %v3001_v63, 1  ;;  %v1044_v14 = vrot.slane %v2983_v55, 1  ;;  %v737_v21 = vshrl.u32 %v3087_v36, 16 }
  0x34   : > { %v682_v62 = vor.u32 %v681_v52, %v677_v44  ;;  %v751_v22 = vshll.u32 %v3109_v3, 16  ;;  %v617_v23 = vor.u32 %v615_v8, %v614_v6  ;;  %v741_v26 = vrot.slane %v739_v9, 1 }
  0x35   : > { %v1046_v55 = vrot.slane %v3087_v36, 1  ;;  %v1047_v27 = vrot.slane %v670_v5, 1  ;;  %v619_v28 = vshrl.u32 %v561_v10, 16  ;;  %v519_v29 = vpack.c.bf16 %v518_v20, %v517_v19 }
  0x36   : > { %v687_v53 = vsel %vm675_vm3, %v682_v62, %v686_v54  ;;  %v535_v30 = vstv %s534_s21  ;;  %v746_v31 = vrot.slane %v744_v17, 1  ;;  %v3147_v32 = vsel %vm1030_vm6, %v1043_v18, %v1044_v14 }
  0x37   : > { %2414 = vmatprep.mubr.msk.bf16.mxu1 %vm772_vm5, %v687_v53  ;;  %v749_v37 = vshrl.u32 %v3109_v3, 16  ;;  %v753_v38 = vrot.slane %v751_v22, 1  ;;  %v3152_v42 = vsel %vm2937_vm4, 0, %v617_v23  ;;  %v537_v43 = vmul.bf16 %v535_v30, %v519_v29 }
  0x38   : > { %2415 = vmatmul.mubr.msk.bf16.vlgmr.msra.gmra.mrb[0].mxu1 %vm772_vm5, %v3007_v7  ;;  %v671_v7 = vsel %vm2937_vm4, %v607_v50, 0  ;;  %v742_v44 = vor.u32 %v741_v26, %v737_v21  ;;  %v3155_v45 = vsel %vm1030_vm6, %v1046_v55, %v1047_v27  ;;  %v621_v47 = vrot.slane %v619_v28, 7 }
  0x39   : > { %2505 = vmatmul.mubr.msk.bf16.vlgmr.msra.gmra.mrb[0].mxu0 %vm772_vm5, %v3097_v4  ;;  %2431 = vmatpush3.bf16.msra.mxu1 %v915_v2  ;;  %v756_v33 = vshll.u32 %v671_v7, 16  ;;  %v622_v48 = vshll.u32 %v561_v10, 16  ;;  %v1050_v49 = vrot.slane %v671_v7, 1  ;;  %v626_v50 = vshrl.u32 %v537_v43, 16 }
  0x3a   : > { %2418 = vmatprep.mubr.msk.bf16.mxu1 %vm772_vm5, %v3015_v11  ;;  %2508 = vmatprep.mubr.msk.bf16.mxu0 %vm772_vm5, %v3113_v12  ;;  %v629_v51 = vshll.u32 %v537_v43, 16  ;;  %v672_v54 = vsel %vm2937_vm4, %v614_v6, 0  ;;  %v763_v56 = vshll.u32 %v3152_v42, 16  ;;  %v1049_v57 = vrot.slane %v3109_v3, 1 }
  0x3b   : > { %2521 = vmatpush3.bf16.msra.mxu0 %v1572_v13  ;;  %2706 = vmatprep.subr.msk.bf16.mxu1 %vm797_vm0, %v3120_v15  ;;  %v758_v52 = vrot.slane %v756_v33, 1  ;;  %v754_v59 = vor.u32 %v753_v38, %v749_v37  ;;  %v1052_v60 = vrot.slane %v3152_v42, 1  ;;  %v1053_v61 = vrot.slane %v672_v54, 1 }
  0x3c   : > { %2712 = vmatprep.subr.msk.bf16.mxu0 %vm797_vm0, %v3125_v16  ;;  %v628_v62 = vrot.slane %v626_v50, 7  ;;  %v3171_v2 = vsel %vm675_vm3, %v742_v44, %v746_v31  ;;  %v624_v5 = vor.u32 %v622_v48, %v621_v47  ;;  %v761_v6 = vshrl.u32 %v3152_v42, 16  ;;  %v490_v48 = vld [vmem:[%s3462_s3 + $0x6] sm:$0x3] }
  0x3d   : > { %v768_v8 = vshll.u32 %v672_v54, 16  ;;  %v765_v10 = vrot.slane %v763_v56, 1  ;;  %v3177_v13 = vsel %vm1030_vm6, %v1049_v57, %v1050_v49  ;;  %v3180_v14 = vsel %vm675_vm3, %v754_v59, %v758_v52  ;;  %v495_v49 = vld [vmem:[%s3462_s3 + $0x10] sm:$0x3] }
  0x3e   : > { %v631_v53 = vor.u32 %v629_v51, %v628_v62  ;;  %v674_v9 = vsel %vm2937_vm4, %v628_v62, 0  ;;  %v3183_v19 = vsel %vm1030_vm6, %v1052_v60, %v1053_v61  ;;  %v3187_v20 = vsel %vm2937_vm4, %v621_v47, 0  ;;  %v1989_v57 = vld [vmem:[%s3351_s16 + $0x10] sm:$0xff]  ;;  %v1987_v62 = vld [vmem:[%s3351_s16] sm:$0xff] }
  0x3f   : > { %v1694_v17 = vshll.u32 %v674_v9, 16  ;;  %v1820_v18 = vrot.slane %v674_v9, 1  ;;  %v3193_v7 = vsel %vm2937_vm4, 0, %v624_v5  ;;  %v766_v25 = vor.u32 %v765_v10, %v761_v6  ;;  %v1990_v6 = vld [vmem:[%s3351_s16 + $0x18] sm:$0xff]  ;;  %v1988_v10 = vld [vmem:[%s3351_s16 + $0x8] sm:$0xff] }
  0x40   : > { %2419 = vmatmul.mubr.msk.bf16.gmra.mrb[4].mxu1 %vm772_vm5, %v3037_v24  ;;  %v664_v21 = vsel %vm2937_vm4, 0, %v631_v53  ;;  %v770_v29 = vrot.slane %v768_v8, 1  ;;  %v1446_v30 = vrot.slane %v3193_v7, 1  ;;  %v1447_v31 = vrot.slane %v3187_v20, 1 }
  0x41   : > { %2509 = vmatmul.mubr.msk.bf16.gmra.mrb[4].mxu0 %vm772_vm5, %v3147_v32  ;;  %2422 = vmatprep.mubr.msk.bf16.mxu1 %vm772_vm5, %v3052_v35  ;;  %v1687_v22 = vshrl.u32 %v664_v21, 16  ;;  %v1689_v23 = vshll.u32 %v664_v21, 16  ;;  %v1819_v26 = vrot.slane %v664_v21, 1  ;;  %v1696_v27 = vrot.slane %v1694_v17, 1 }
  0x42   : > { %2512 = vmatprep.mubr.msk.bf16.mxu0 %vm772_vm5, %v3155_v45  ;;  %v3210_v38 = vsel %vm675_vm3, %v766_v25, %v770_v29  ;;  %v3213_v43 = vsel %vm1030_vm6, %v1446_v30, %v1447_v31  ;;  %v1080_v44 = vsel %vm797_vm0, %v3120_v15, 0  ;;  %v1702_v47 = vsel %vm797_vm0, %v3125_v16, 0 }
  0x43   : > { %v1691_v55 = vrot.slane %v1689_v23, 1  ;;  %v3200_v28 = vsel %vm1030_vm6, %v1819_v26, %v1820_v18  ;;  %v1032_v15 = vrot.slane %v3049_v34, 1  ;;  %v1031_v16 = vrot.slane %v3065_v41, 1 }
  0x44   : > { %v1199_v51 = vsel %vm797_vm0, %v490_v48, 0  ;;  %v1826_v52 = vsel %vm797_vm0, %v495_v49, 0  ;;  %v1314_v34 = vshrl.u32 %v3193_v7, 16 }
  0x45   : > { %v1692_v33 = vor.u32 %v1691_v55, %v1687_v22  ;;  %v1033_v50 = vsel %vm1030_vm6, %v1031_v16, %v1032_v15  ;;  %v1994_v16 = vld [vmem:[%s3351_s16 + $0x38] sm:$0xff] }
  0x47   : > { %v1697_v37 = vsel %vm675_vm3, %v1692_v33, %v1696_v27 }
  0x48   : > { %2423 = vmatmul.mubr.msk.bf16.gmra.mrb[8].mxu1 %vm772_vm5, %v3171_v2 }
  0x49   : > { %2513 = vmatmul.mubr.msk.bf16.gmra.mrb[8].mxu0 %vm772_vm5, %v3177_v13  ;;  %2426 = vmatprep.mubr.msk.bf16.mxu1 %vm772_vm5, %v3180_v14 }
  0x4a   : > { %2516 = vmatprep.mubr.msk.bf16.mxu0 %vm772_vm5, %v3183_v19 }
  0x50   : > { %2427 = vmatmul.mubr.msk.bf16.gmra.mrb[12].mxu1 %vm772_vm5, %v3210_v38 }
  0x51   : > { %2517 = vmatmul.mubr.msk.bf16.gmra.mrb[12].mxu0 %vm772_vm5, %v3213_v43  ;;  %2432 = vmatprep.mubr.msk.bf16.mxu1 %vm772_vm5, %v3065_v41 }
  0x52   : > { %2522 = vmatprep.mubr.msk.bf16.mxu0 %vm772_vm5, %v2970_v46 }
  0x58   : > { %2433 = vmatmul.mubr.msk.bf16.vlgmr.msra.gmra.mrb[0].mxu1 %vm772_vm5, %v2958_v40 }
  0x59   : > { %2523 = vmatmul.mubr.msk.bf16.vlgmr.msra.gmra.mrb[0].mxu0 %vm772_vm5, %v2993_v58  ;;  %2449 = vmatpush3.bf16.msra.mxu1 %v1080_v44 }
  0x5a   : > { %2436 = vmatprep.mubr.msk.bf16.mxu1 %vm772_vm5, %v2970_v46  ;;  %2526 = vmatprep.mubr.msk.bf16.mxu0 %vm772_vm5, %v3001_v63 }
  0x5b   : > { %2539 = vmatpush3.bf16.msra.mxu0 %v1702_v47  ;;  %2707 = vmatprep.subr.msk.bf16.mxu1 %vm797_vm0, %v490_v48  ;;  %v1991_v48 = vld [vmem:[%s3351_s16 + $0x20] sm:$0xff] }
  0x5c   : > { %2713 = vmatprep.subr.msk.bf16.mxu0 %vm797_vm0, %v495_v49 }
  0x60   : > { %2437 = vmatmul.mubr.msk.bf16.gmra.mrb[4].mxu1 %vm772_vm5, %v2993_v58 }
  0x61   : > { %2527 = vmatmul.mubr.msk.bf16.gmra.mrb[4].mxu0 %vm772_vm5, %v3087_v36  ;;  %2440 = vmatprep.mubr.msk.bf16.mxu1 %vm772_vm5, %v3001_v63 }
  0x62   : > { %2530 = vmatprep.mubr.msk.bf16.mxu0 %vm772_vm5, %v3109_v3 }
  0x68   : > { %2441 = vmatmul.mubr.msk.bf16.gmra.mrb[8].mxu1 %vm772_vm5, %v3087_v36 }
  0x69   : > { %2531 = vmatmul.mubr.msk.bf16.gmra.mrb[8].mxu0 %vm772_vm5, %v3152_v42  ;;  %2444 = vmatprep.mubr.msk.bf16.mxu1 %vm772_vm5, %v3109_v3 }
  0x6a   : > { %2534 = vmatprep.mubr.msk.bf16.mxu0 %vm772_vm5, %v3193_v7 }
  0x70   : > { %2445 = vmatmul.mubr.msk.bf16.gmra.mrb[12].mxu1 %vm772_vm5, %v3152_v42 }
  0x71   : > { %2535 = vmatmul.mubr.msk.bf16.gmra.mrb[12].mxu0 %vm772_vm5, %v664_v21  ;;  %2450 = vmatprep.mubr.msk.bf16.mxu1 %vm772_vm5, %v1033_v50 }
  0x72   : > { %2540 = vmatprep.mubr.msk.bf16.mxu0 %vm772_vm5, %v3015_v11  ;;  %v1316_v11 = vshll.u32 %v3193_v7, 16 }
  0x74   : > { %v1318_v41 = vrot.slane %v1316_v11, 1  ;;  %v1992_v11 = vld [vmem:[%s3351_s16 + $0x28] sm:$0xff] }
  0x78   : > { %2451 = vmatmul.mubr.msk.bf16.vlgmr.msra.gmra.mrb[0].mxu1 %vm772_vm5, %v3059_v39  ;;  %v1321_v39 = vshll.u32 %v3187_v20, 16 }
  0x79   : > { %2541 = vmatmul.mubr.msk.bf16.vlgmr.msra.gmra.mrb[0].mxu0 %vm772_vm5, %v3037_v24  ;;  %2467 = vmatpush3.bf16.msra.mxu1 %v1199_v51  ;;  %v1319_v24 = vor.u32 %v1318_v41, %v1314_v34 }
  0x7a   : > { %2454 = vmatprep.mubr.msk.bf16.mxu1 %vm772_vm5, %v3097_v4  ;;  %2544 = vmatprep.mubr.msk.bf16.mxu0 %vm772_vm5, %v3052_v35  ;;  %v1323_v35 = vrot.slane %v1321_v39, 1 }
  0x7b   : > { %2557 = vmatpush3.bf16.msra.mxu0 %v1826_v52  ;;  %2709 = vmatprep.subr.msk.bf16.mxu1 %vm797_vm0, %v2869_v0 }
  0x7c   : > { %v1324_v0 = vsel %vm675_vm3, %v1319_v24, %v1323_v35 }
  0x80   : > { %2455 = vmatmul.mubr.msk.bf16.gmra.mrb[4].mxu1 %vm772_vm5, %v3113_v12 }
  0x81   : > { %2545 = vmatmul.mubr.msk.bf16.gmra.mrb[4].mxu0 %vm772_vm5, %v3171_v2  ;;  %2458 = vmatprep.mubr.msk.bf16.mxu1 %vm772_vm5, %v3147_v32 }
  0x82   : > { %2548 = vmatprep.mubr.msk.bf16.mxu0 %vm772_vm5, %v3180_v14 }
  0x88   : > { %2459 = vmatmul.mubr.msk.bf16.gmra.mrb[8].mxu1 %vm772_vm5, %v3155_v45 }
  0x89   : > { %2549 = vmatmul.mubr.msk.bf16.gmra.mrb[8].mxu0 %vm772_vm5, %v3210_v38  ;;  %2462 = vmatprep.mubr.msk.bf16.mxu1 %vm772_vm5, %v3177_v13 }
  0x8a   : > { %2552 = vmatprep.mubr.msk.bf16.mxu0 %vm772_vm5, %v1324_v0 }
  0x90   : > { %2463 = vmatmul.mubr.msk.bf16.gmra.mrb[12].mxu1 %vm772_vm5, %v3183_v19 }
  0x91   : > { %2553 = vmatmul.mubr.msk.bf16.gmra.mrb[12].mxu0 %vm772_vm5, %v1697_v37  ;;  %2468 = vmatprep.mubr.msk.bf16.mxu1 %vm772_vm5, %v2958_v40 }
  0x92   : > { %2558 = vmatprep.mubr.msk.bf16.mxu0 %vm772_vm5, %v3097_v4 }
  0x98   : > { %2469 = vmatmul.mubr.msk.bf16.vlgmr.msra.gmra.mrb[0].mxu1 %vm772_vm5, %v2970_v46  ;;  %v3345_v46 = vld [vmem:[%s3464_s5] ss:$0 sm:$0xff] }
  0x99   : > { %2559 = vmatmul.mubr.msk.bf16.vlgmr.msra.gmra.mrb[0].mxu0 %vm772_vm5, %v3113_v12  ;;  %2575 = vmatpush3.bf16.msra.mxu1 %v2878_v1 }
  0x9a   : > { %2472 = vmatprep.mubr.msk.bf16.mxu1 %vm772_vm5, %v2993_v58  ;;  %2562 = vmatprep.mubr.msk.bf16.mxu0 %vm772_vm5, %v3147_v32 }
  0xa0   : > { %2473 = vmatmul.mubr.msk.bf16.gmra.mrb[4].mxu1 %vm772_vm5, %v3001_v63 }
  0xa1   : > { %2563 = vmatmul.mubr.msk.bf16.gmra.mrb[4].mxu0 %vm772_vm5, %v3155_v45  ;;  %2476 = vmatprep.mubr.msk.bf16.mxu1 %vm772_vm5, %v3087_v36 }
  0xa2   : > { %2566 = vmatprep.mubr.msk.bf16.mxu0 %vm772_vm5, %v3177_v13 }
  0xa8   : > { %2477 = vmatmul.mubr.msk.bf16.gmra.mrb[8].mxu1 %vm772_vm5, %v3109_v3  ;;  %v3356_v3 = vld [vmem:[%s3465_s6] ss:$0 sm:$0xff] }
  0xa9   : > { %2567 = vmatmul.mubr.msk.bf16.gmra.mrb[8].mxu0 %vm772_vm5, %v3183_v19  ;;  %2480 = vmatprep.mubr.msk.bf16.mxu1 %vm772_vm5, %v3152_v42 }
  0xaa   : > { %2570 = vmatprep.mubr.msk.bf16.mxu0 %vm772_vm5, %v3213_v43 }
  0xb0   : > { %2481 = vmatmul.mubr.msk.bf16.gmra.mrb[12].mxu1 %vm772_vm5, %v3193_v7 }
  0xb1   : > { %2571 = vmatmul.mubr.msk.bf16.gmra.mrb[12].mxu0 %vm772_vm5, %v3200_v28  ;;  %2494 = vmatprep.mubr.msk.bf16.mxu1 %vm772_vm5, %v3171_v2 }
  0xb8   : > { %2495 = vmatmul.mubr.msk.bf16.vlgmr.msra.gmra.mrb[8].mxu1 %vm772_vm5, %v3180_v14 }
  0xb9   : > { %2498 = vmatprep.mubr.msk.bf16.mxu1 %vm772_vm5, %v3210_v38  ;;  %v1993_v38 = vld [vmem:[%s3351_s16 + $0x30] sm:$0xff] }
  0xc0   : > { %2499 = vmatmul.mubr.msk.bf16.gmra.mrb[12].mxu1 %vm772_vm5, %v1324_v0 }
 0x16b   : > { %v2470_v1 = vpop.f32.mrb[0].mxu1 }
 0x16c   : > { %v2560_v40 = vpop.f32.mrb[0].mxu0  ;;  %v1235_v58 = vpop.f32.mrb[1].mxu1 }
 0x16d   : > { %v2576_v63 = vadd.f32 %v2560_v40, %v2470_v1  ;;  %v1862_v36 = vpop.f32.mrb[1].mxu0  ;;  %v2471_v4 = vpop.f32.mrb[2].mxu1 }
 0x16e   : > { %v2577_v12 = vadd.f32 %v1862_v36, %v1235_v58  ;;  %v2561_v32 = vpop.f32.mrb[2].mxu0  ;;  %v1238_v42 = vpop.f32.mrb[3].mxu1 }
 0x16f   : > { %v1950_v45 = vmul.f32 %v2576_v63, %v3345_v46  ;;  %v2578_v54 = vadd.f32 %v2561_v32, %v2471_v4  ;;  %v1865_v56 = vpop.f32.mrb[3].mxu0 }
 0x170   : > { %v1948_v59 = vmul.f32 %v2577_v12, %v3345_v46  ;;  %v2579_v60 = vadd.f32 %v1865_v56, %v1238_v42 }
 0x171   : > { %v1973_v61 = vadd.f32 %v3356_v3, %v1950_v45  ;;  %v1951_v2 = vmul.f32 %v2578_v54, %v3345_v46 }
 0x172   : > { %v1971_v5 = vadd.f32 %v3356_v3, %v1948_v59  ;;  %v1949_v8 = vmul.f32 %v2579_v60, %v3345_v46 }
 0x173   : > { %v2005_v53 = vadd.f32 %v1989_v57, %v1973_v61  ;;  %v1974_v9 = vadd.f32 %v3356_v3, %v1951_v2  ;;  %v2474_v13 = vpop.f32.mrb[4].mxu1 }
 0x174   : > { %v2003_v17 = vadd.f32 %v1987_v62, %v1971_v5  ;;  %v1972_v18 = vadd.f32 %v3356_v3, %v1949_v8  ;;  %v2564_v14 = vpop.f32.mrb[4].mxu0  ;;  %v1251_v19 = vpop.f32.mrb[5].mxu1  ;;  %v1997_v5 = vld [vmem:[%s3351_s16 + $0x50] sm:$0xff] }
 0x175   : > { %v2021_v20 = vmax.f32 %v2005_v53, 0.0  ;;  %v2006_v21 = vadd.f32 %v1990_v6, %v1974_v9  ;;  %v2580_v7 = vadd.f32 %v2564_v14, %v2474_v13  ;;  %v1878_v22 = vpop.f32.mrb[5].mxu0  ;;  %v2475_v23 = vpop.f32.mrb[6].mxu1  ;;  %v1995_v9 = vld [vmem:[%s3351_s16 + $0x40] sm:$0xff] }
 0x176   : > { %v2019_v26 = vmax.f32 %v2003_v17, 0.0  ;;  %v2004_v55 = vadd.f32 %v1988_v10, %v1972_v18  ;;  %v2581_v27 = vadd.f32 %v1878_v22, %v1251_v19  ;;  %v2565_v28 = vpop.f32.mrb[6].mxu0  ;;  %v1254_v25 = vpop.f32.mrb[7].mxu1  ;;  %v1998_v17 = vld [vmem:[%s3351_s16 + $0x58] sm:$0xff] }
 0x177   : > { %2037 = vst.msk [vmem:[%s3373_s19 + $0x10] sm:$0xff] %vm772_vm5, %v2021_v20  ;;  %v2022_v29 = vmax.f32 %v2006_v21, 0.0  ;;  %v1954_v30 = vmul.f32 %v2580_v7, %v3345_v46  ;;  %v2582_v31 = vadd.f32 %v2565_v28, %v2475_v23  ;;  %v1881_v33 = vpop.f32.mrb[7].mxu0  ;;  %v1996_v20 = vld [vmem:[%s3351_s16 + $0x48] sm:$0xff] }
 0x178   : > { %2035 = vst.msk [vmem:[%s3373_s19] sm:$0xff] %vm772_vm5, %v2019_v26  ;;  %v2020_v37 = vmax.f32 %v2004_v55, 0.0  ;;  %v1952_v43 = vmul.f32 %v2581_v27, %v3345_v46  ;;  %v2583_v44 = vadd.f32 %v1881_v33, %v1254_v25 }
 0x179   : > { %2038 = vst.msk [vmem:[%s3373_s19 + $0x18] sm:$0xff] %vm772_vm5, %v2022_v29  ;;  %v1977_v47 = vadd.f32 %v3356_v3, %v1954_v30  ;;  %v1955_v49 = vmul.f32 %v2582_v31, %v3345_v46 }
 0x17a   : > { %2036 = vst.msk [vmem:[%s3373_s19 + $0x8] sm:$0xff] %vm772_vm5, %v2020_v37  ;;  %v1975_v15 = vadd.f32 %v3356_v3, %v1952_v43  ;;  %v1953_v50 = vmul.f32 %v2583_v44, %v3345_v46  ;;  %v2001_v44 = vld [vmem:[%s3351_s16 + $0x70] sm:$0xff] }
 0x17b   : > { %v2009_v51 = vadd.f32 %v1993_v38, %v1977_v47  ;;  %v1978_v52 = vadd.f32 %v3356_v3, %v1955_v49 }
 0x17c   : > { %v2007_v34 = vadd.f32 %v1991_v48, %v1975_v15  ;;  %v1976_v41 = vadd.f32 %v3356_v3, %v1953_v50  ;;  %v2568_v39 = vpop.f32.mrb[8].mxu0  ;;  %v1999_v15 = vld [vmem:[%s3351_s16 + $0x60] sm:$0xff] }
 0x17d   : > { %v2025_v24 = vmax.f32 %v2009_v51, 0.0  ;;  %v2010_v35 = vadd.f32 %v1994_v16, %v1978_v52  ;;  %v1894_v0 = vpop.f32.mrb[9].mxu0  ;;  %v2002_v51 = vld [vmem:[%s3351_s16 + $0x78] sm:$0xff] }
 0x17e   : > { %v2023_v1 = vmax.f32 %v2007_v34, 0.0  ;;  %v2008_v40 = vadd.f32 %v1992_v11, %v1976_v41  ;;  %v2569_v58 = vpop.f32.mrb[10].mxu0  ;;  %v2000_v41 = vld [vmem:[%s3351_s16 + $0x68] sm:$0xff] }
 0x17f   : > { %2041 = vst.msk [vmem:[%s3373_s19 + $0x30] sm:$0xff] %vm772_vm5, %v2025_v24  ;;  %v2026_v63 = vmax.f32 %v2010_v35, 0.0  ;;  %v1897_v36 = vpop.f32.mrb[11].mxu0 }
 0x180   : > { %2039 = vst.msk [vmem:[%s3373_s19 + $0x20] sm:$0xff] %vm772_vm5, %v2023_v1  ;;  %v2024_v4 = vmax.f32 %v2008_v40, 0.0 }
 0x181   : > { %2042 = vst.msk [vmem:[%s3373_s19 + $0x38] sm:$0xff] %vm772_vm5, %v2026_v63 }
 0x182   : > { %2040 = vst.msk [vmem:[%s3373_s19 + $0x28] sm:$0xff] %vm772_vm5, %v2024_v4 }
 0x184   : > { %v2572_v12 = vpop.f32.mrb[12].mxu0 }
 0x185   : > { %v1910_v32 = vpop.f32.mrb[13].mxu0 }
 0x186   : > { %v2573_v42 = vpop.f32.mrb[14].mxu0 }
 0x187   : > { %v1913_v45 = vpop.f32.mrb[15].mxu0 }
 0x18b   : > { %v2496_v54 = vpop.f32.mrb[8].mxu1 }
 0x18c   : > { %v2584_v56 = vadd.f32 %v2568_v39, %v2496_v54  ;;  %v1397_v57 = vpop.f32.mrb[9].mxu1 }
 0x18d   : > { %v2585_v59 = vadd.f32 %v1894_v0, %v1397_v57  ;;  %v2497_v60 = vpop.f32.mrb[10].mxu1 }
 0x18e   : > { %v1958_v61 = vmul.f32 %v2584_v56, %v3345_v46  ;;  %v2586_v62 = vadd.f32 %v2569_v58, %v2497_v60  ;;  %v1400_v2 = vpop.f32.mrb[11].mxu1 }
 0x18f   : > { %v1956_v6 = vmul.f32 %v2585_v59, %v3345_v46  ;;  %v2587_v8 = vadd.f32 %v1897_v36, %v1400_v2 }
 0x190   : > { %v1981_v53 = vadd.f32 %v3356_v3, %v1958_v61  ;;  %v1959_v10 = vmul.f32 %v2586_v62, %v3345_v46 }
 0x191   : > { %v1979_v13 = vadd.f32 %v3356_v3, %v1956_v6  ;;  %v1957_v18 = vmul.f32 %v2587_v8, %v3345_v46 }
 0x192   : > { %v2013_v14 = vadd.f32 %v1997_v5, %v1981_v53  ;;  %v1982_v19 = vadd.f32 %v3356_v3, %v1959_v10 }
 0x193   : > { %v2011_v21 = vadd.f32 %v1995_v9, %v1979_v13  ;;  %v1980_v7 = vadd.f32 %v3356_v3, %v1957_v18  ;;  %v2500_v22 = vpop.f32.mrb[12].mxu1 }
 0x194   : > { %v2029_v23 = vmax.f32 %v2013_v14, 0.0  ;;  %v2014_v26 = vadd.f32 %v1998_v17, %v1982_v19  ;;  %v2588_v55 = vadd.f32 %v2572_v12, %v2500_v22  ;;  %v1413_v27 = vpop.f32.mrb[13].mxu1 }
 0x195   : > { %v2027_v28 = vmax.f32 %v2011_v21, 0.0  ;;  %v2012_v25 = vadd.f32 %v1996_v20, %v1980_v7  ;;  %v2589_v29 = vadd.f32 %v1910_v32, %v1413_v27  ;;  %v2501_v30 = vpop.f32.mrb[14].mxu1 }
 0x196   : > { %2045 = vst.msk [vmem:[%s3373_s19 + $0x50] sm:$0xff] %vm772_vm5, %v2029_v23  ;;  %v2030_v31 = vmax.f32 %v2014_v26, 0.0  ;;  %v1962_v33 = vmul.f32 %v2588_v55, %v3345_v46  ;;  %v2590_v37 = vadd.f32 %v2573_v42, %v2501_v30  ;;  %v1416_v38 = vpop.f32.mrb[15].mxu1 }
 0x197   : > { %2043 = vst.msk [vmem:[%s3373_s19 + $0x40] sm:$0xff] %vm772_vm5, %v2027_v28  ;;  %v2028_v43 = vmax.f32 %v2012_v25, 0.0  ;;  %v1960_v47 = vmul.f32 %v2589_v29, %v3345_v46  ;;  %v2591_v48 = vadd.f32 %v1913_v45, %v1416_v38 }
 0x198   : > { %2046 = vst.msk [vmem:[%s3373_s19 + $0x58] sm:$0xff] %vm772_vm5, %v2030_v31  ;;  %v1985_v49 = vadd.f32 %v3356_v3, %v1962_v33  ;;  %v1963_v16 = vmul.f32 %v2590_v37, %v3345_v46 }
 0x199   : > { %2044 = vst.msk [vmem:[%s3373_s19 + $0x48] sm:$0xff] %vm772_vm5, %v2028_v43  ;;  %v1983_v50 = vadd.f32 %v3356_v3, %v1960_v47  ;;  %v1961_v52 = vmul.f32 %v2591_v48, %v3345_v46 }
 0x19a   : > { %v2017_v11 = vadd.f32 %v2001_v44, %v1985_v49  ;;  %v1986_v34 = vadd.f32 %v3356_v3, %v1963_v16 }
 0x19b   : > { %v2015_v39 = vadd.f32 %v1999_v15, %v1983_v50  ;;  %v1984_v24 = vadd.f32 %v3356_v3, %v1961_v52 }
 0x19c   : > { %v2033_v35 = vmax.f32 %v2017_v11, 0.0  ;;  %v2018_v0 = vadd.f32 %v2002_v51, %v1986_v34 }
 0x19d   : > { %v2031_v1 = vmax.f32 %v2015_v39, 0.0  ;;  %v2016_v40 = vadd.f32 %v2000_v41, %v1984_v24 }
 0x19e   : > { %2049 = vst.msk [vmem:[%s3373_s19 + $0x70] sm:$0xff] %vm772_vm5, %v2033_v35  ;;  %v2034_v58 = vmax.f32 %v2018_v0, 0.0 }
 0x19f   : > { %2047 = vst.msk [vmem:[%s3373_s19 + $0x60] sm:$0xff] %vm772_vm5, %v2031_v1  ;;  %v2032_v63 = vmax.f32 %v2016_v40, 0.0 }
 0x1a0   : > { %2050 = vst.msk [vmem:[%s3373_s19 + $0x78] sm:$0xff] %vm772_vm5, %v2034_v58 }
 0x1a1   : > { %2048 = vst.msk [vmem:[%s3373_s19 + $0x68] sm:$0xff] %vm772_vm5, %v2032_v63 }
 0x1a2 PF: > { %s17_s28 = sadd.s32 1, %s2792_s28   ;;  %s3470_s24 = smov %s2784_s26 }
 0x1a3   : > { %p14_p0 = scmp.ge.s32.totalorder %s17_s28, 6   ;;  %s3471_s25 = smov %s2788_s27 }
 0x1a4   : > { %s3472_s26 = smov %s3475_s29  ;;  %s3473_s27 = smov %s3479_s30 }
 0x1a5   :  { %16 = sbr.rel (!%p14_p0) target bundleno = 3 (0x3), region = 87 }

</bundles_post_ra>
